<compile_context>
chip_gen: v6e
topology: v6e:2x2x1
jax: 0.10.0
libtpu: 0.0.40
codegen_flags: <defaults>
</compile_context>

<pallas_src>
import functools

import jax
import jax.numpy as jnp
import numpy as np
from jax.experimental import pallas as pl
from jax.experimental.pallas import tpu as pltpu


# ----------------------------------------------------------------------------
# Pallas kernel
# ----------------------------------------------------------------------------
def _sepconv_kernel(x_ref, w_ref, s_ref, b_ref, o_ref, xp_ref, *,
                    kh, kw, dil, relu, H, W, C, ph, pw, Ho, Wo):
    """Depthwise conv + folded BN (+ optional ReLU) for one batch element.

    Layout: (W, C) is flattened onto the lane (minor) dim -> lane-dense I/O.

    x_ref : (1, H, W*C)      input (NHWC with trailing dims flattened)
    w_ref : (kh*kw, Wo*C)    depthwise weights, tiled across output width
    s_ref : (1, Wo*C)        folded BN scale, tiled across output width
    b_ref : (1, Wo*C)        folded BN bias,  tiled across output width
    o_ref : (1, Ho, Wo*C)
    xp_ref: (Hp, Wp*C) f32 VMEM scratch (zero-padded input; pad folded in)
    """
    Hp = H + 2 * ph
    WpC = (W + 2 * pw) * C

    # Fold spatial zero-padding into the kernel (no padded HBM copy).
    if ph > 0 or pw > 0:
        xp_ref[...] = jnp.zeros((Hp, WpC), jnp.float32)
    xp_ref[ph:ph + H, pw * C:(pw + W) * C] = x_ref[0].astype(jnp.float32)

    acc = jnp.zeros((Ho, Wo * C), jnp.float32)
    for i in range(kh):
        for j in range(kw):
            xs = xp_ref[i * dil:i * dil + Ho,
                        j * dil * C:j * dil * C + Wo * C]
            acc = acc + xs * w_ref[i * kw + j, :]

    y = acc * s_ref[0] + b_ref[0]
    if relu:
        y = jnp.maximum(y, 0.0)
    o_ref[0] = y.astype(o_ref.dtype)


# ----------------------------------------------------------------------------
# Wrapper (NCHW public interface, NHWC-flat internal layout)
# ----------------------------------------------------------------------------
def basic_sep_conv_forward(x_nchw, params, *, kernel_size, stride=1,
                           padding=0, dilation=1, relu=True):
    """BasicSepConv.forward: depthwise conv (bias=False) + eval-BN + ReLU."""
    if stride != 1:
        # TODO(synk): stride > 1 is not implemented in the lane-dense fast
        #             path (all BasicSepConv uses in RFB_Net_mobile are s=1).
        raise NotImplementedError("BasicSepConv Pallas kernel supports stride=1")

    N, C, H, W = x_nchw.shape
    kh, kw = (kernel_size, kernel_size) if isinstance(kernel_size, int) \
        else kernel_size
    ph = pw = padding
    dil = dilation
    Ho = (H + 2 * ph - dil * (kh - 1) - 1) // stride + 1
    Wo = (W + 2 * pw - dil * (kw - 1) - 1) // stride + 1

    # NCHW -> NHWC, then flatten (W, C) onto the lane dim (free reshape).
    x = jnp.transpose(x_nchw, (0, 2, 3, 1)).reshape(N, H, W * C)

    # Pre-tile per-channel quantities across the output width so the kernel's
    # broadcasts are plain lane-aligned multiplies (no in-kernel relayout).
    w_t = jnp.tile(params["w"].reshape(kh * kw, C), (1, Wo))       # (kh*kw, Wo*C)
    s_t = jnp.tile(params["scale"].reshape(1, C), (1, Wo))         # (1, Wo*C)
    b_t = jnp.tile(params["bias"].reshape(1, C), (1, Wo))          # (1, Wo*C)

    kern = functools.partial(_sepconv_kernel, kh=kh, kw=kw, dil=dil,
                             relu=relu, H=H, W=W, C=C, ph=ph, pw=pw,
                             Ho=Ho, Wo=Wo)

    out_flat = pl.pallas_call(
        kern,
        out_shape=jax.ShapeDtypeStruct((N, Ho, Wo * C), x_nchw.dtype),
        grid=(N,),
        in_specs=[
            pl.BlockSpec((1, H, W * C), lambda n: (n, 0, 0)),
            pl.BlockSpec((kh * kw, Wo * C), lambda n: (0, 0)),
            pl.BlockSpec((1, Wo * C), lambda n: (0, 0)),
            pl.BlockSpec((1, Wo * C), lambda n: (0, 0)),
        ],
        out_specs=pl.BlockSpec((1, Ho, Wo * C), lambda n: (n, 0, 0)),
        scratch_shapes=[pltpu.VMEM((H + 2 * ph, (W + 2 * pw) * C),
                                   jnp.float32)],
        compiler_params=pltpu.CompilerParams(
            dimension_semantics=("parallel",)),
    )(x, w_t, s_t, b_t)

    out = out_flat.reshape(N, Ho, Wo, C)
    return jnp.transpose(out, (0, 3, 1, 2))      # back to NCHW


# ----------------------------------------------------------------------------
# BN folding helper (eval mode)
# ----------------------------------------------------------------------------
def fold_bn(gamma, beta, running_mean, running_var, eps=1e-5):
    scale = gamma / jnp.sqrt(running_var + eps)
    bias = beta - running_mean * scale
    return scale, bias


# ----------------------------------------------------------------------------
# Pure-JAX reference (for correctness check)
# ----------------------------------------------------------------------------
def basic_sep_conv_reference(x_nchw, params, *, kernel_size, stride=1,
                             padding=0, dilation=1, relu=True):
    N, C, H, W = x_nchw.shape
    x = jnp.transpose(x_nchw, (0, 2, 3, 1))
    w = params["w"][:, :, None, :]                      # HWIO, I=1, O=C
    y = jax.lax.conv_general_dilated(
        x, w, window_strides=(stride, stride),
        padding=((padding, padding), (padding, padding)),
        rhs_dilation=(dilation, dilation),
        dimension_numbers=("NHWC", "HWIO", "NHWC"),
        feature_group_count=C,
        precision=jax.lax.Precision.HIGHEST)
    y = y * params["scale"].reshape(1, 1, 1, C) + params["bias"].reshape(1, 1, 1, C)
    if relu:
        y = jnp.maximum(y, 0.0)
    return jnp.transpose(y, (0, 3, 1, 2))


# ----------------------------------------------------------------------------
if __name__ == "__main__":
    key = jax.random.PRNGKey(0)
    kx, kw_, kg, kb, km, kv = jax.random.split(key, 6)

    # BasicSepConv(in_planes=C, kernel_size=3, ...) on small shapes.
    N, C, H, W = 2, 32, 16, 16
    x_nchw = jax.random.normal(kx, (N, C, H, W), jnp.float32)

    w = jax.random.normal(kw_, (3, 3, C), jnp.float32) / 3.0     # (kh, kw, C)
    gamma = jax.random.uniform(kg, (C,), jnp.float32, 0.5, 1.5)
    beta = jax.random.normal(kb, (C,), jnp.float32) * 0.1
    mean = jax.random.normal(km, (C,), jnp.float32) * 0.1
    var = jax.random.uniform(kv, (C,), jnp.float32, 0.5, 1.5)
    scale, bias = fold_bn(gamma, beta, mean, var, eps=1e-5)
    params = {"w": w, "scale": scale, "bias": bias}

    # Config A: dilated usage (kernel_size=3, padding=3, dilation=3, relu=True)
    # Config B: plain usage   (kernel_size=3, padding=1, dilation=1, relu=False)
    configs = [
        dict(kernel_size=3, stride=1, padding=3, dilation=3, relu=True),
        dict(kernel_size=3, stride=1, padding=1, dilation=1, relu=False),
    ]

    for cfg in configs:
        out = basic_sep_conv_forward(x_nchw, params, **cfg)
        out = jax.block_until_ready(out)
        ref = basic_sep_conv_reference(x_nchw, params, **cfg)
        ref = jax.block_until_ready(ref)
        np.testing.assert_allclose(np.asarray(out), np.asarray(ref),
                                   rtol=1e-4, atol=1e-4)
        assert out.shape == (N, C, H, W) and out.dtype == jnp.float32

    print("KERNEL_OK")
</pallas_src>

<mosaic_0001>
module attributes {stable_mosaic.version = 11 : i64} {
  func.func @_sepconv_kernel(%arg0: i32, %arg1: memref<1x16x512xf32, #tpu.memory_space<vmem>>, %arg2: memref<9x512xf32, #tpu.memory_space<vmem>>, %arg3: memref<1x512xf32, #tpu.memory_space<vmem>>, %arg4: memref<1x512xf32, #tpu.memory_space<vmem>>, %arg5: memref<1x16x512xf32, #tpu.memory_space<vmem>>, %arg6: memref<22x704xf32, #tpu.memory_space<vmem>>) attributes {dimension_semantics = [#tpu.dimension_semantics<parallel>], iteration_bounds = array<i64: 2>, scalar_prefetch = 0 : i64, scratch_operands = 1 : i64, tpu.core_type = #tpu.core_type<tc>, window_params = [{transform_indices = @transform_0, window_bounds = array<i64: 1, 16, 512>}, {pipeline_mode = #tpu.pipeline_mode<synchronous>, transform_indices = @transform_1, window_bounds = array<i64: 9, 512>}, {pipeline_mode = #tpu.pipeline_mode<synchronous>, transform_indices = @transform_2, window_bounds = array<i64: 1, 512>}, {pipeline_mode = #tpu.pipeline_mode<synchronous>, transform_indices = @transform_3, window_bounds = array<i64: 1, 512>}, {transform_indices = @transform_4, window_bounds = array<i64: 1, 16, 512>}]} {
    %cst = arith.constant 0.000000e+00 : f32
    %0 = vector.broadcast %cst : f32 to vector<22x704xf32>
    %c0 = arith.constant 0 : index
    %c0_0 = arith.constant 0 : index
    %1 = vector.load %arg6[%c0, %c0_0] : memref<22x704xf32, #tpu.memory_space<vmem>>, vector<22x704xf32>
    tpu.vector_store %arg6[%c0, %c0_0], %0 {strides = array<i32>} : memref<22x704xf32, #tpu.memory_space<vmem>>, vector<22x704xf32>,
    %c0_1 = arith.constant 0 : index
    %c0_2 = arith.constant 0 : index
    %c0_3 = arith.constant 0 : index
    %2 = vector.load %arg1[%c0_1, %c0_2, %c0_3] : memref<1x16x512xf32, #tpu.memory_space<vmem>>, vector<1x16x512xf32>
    %3 = vector.shape_cast %2 : vector<1x16x512xf32> to vector<16x512xf32>
    %c3 = arith.constant 3 : index
    %c96 = arith.constant 96 : index
    %4 = vector.load %arg6[%c3, %c96] : memref<22x704xf32, #tpu.memory_space<vmem>>, vector<16x512xf32>
    tpu.vector_store %arg6[%c3, %c96], %3 {strides = array<i32>} : memref<22x704xf32, #tpu.memory_space<vmem>>, vector<16x512xf32>,
    %cst_4 = arith.constant 0.000000e+00 : f32
    %5 = vector.broadcast %cst_4 : f32 to vector<16x512xf32>
    %c0_5 = arith.constant 0 : index
    %c0_6 = arith.constant 0 : index
    %6 = vector.load %arg6[%c0_5, %c0_6] : memref<22x704xf32, #tpu.memory_space<vmem>>, vector<16x512xf32>
    %c0_7 = arith.constant 0 : index
    %c0_8 = arith.constant 0 : index
    %7 = vector.load %arg2[%c0_7, %c0_8] : memref<9x512xf32, #tpu.memory_space<vmem>>, vector<1x512xf32>
    %8 = vector.shape_cast %7 : vector<1x512xf32> to vector<512xf32>
    %9 = vector.shape_cast %8 : vector<512xf32> to vector<1x512xf32>
    %10 = vector.broadcast %9 : vector<1x512xf32> to vector<16x512xf32>
    %11 = arith.mulf %6, %10 : vector<16x512xf32>
    %12 = arith.addf %5, %11 : vector<16x512xf32>
    %c0_9 = arith.constant 0 : index
    %c96_10 = arith.constant 96 : index
    %13 = vector.load %arg6[%c0_9, %c96_10] : memref<22x704xf32, #tpu.memory_space<vmem>>, vector<16x512xf32>
    %c1 = arith.constant 1 : index
    %c0_11 = arith.constant 0 : index
    %14 = vector.load %arg2[%c1, %c0_11] : memref<9x512xf32, #tpu.memory_space<vmem>>, vector<1x512xf32>
    %15 = vector.shape_cast %14 : vector<1x512xf32> to vector<512xf32>
    %16 = vector.shape_cast %15 : vector<512xf32> to vector<1x512xf32>
    %17 = vector.broadcast %16 : vector<1x512xf32> to vector<16x512xf32>
    %18 = arith.mulf %13, %17 : vector<16x512xf32>
    %19 = arith.addf %12, %18 : vector<16x512xf32>
    %c0_12 = arith.constant 0 : index
    %c192 = arith.constant 192 : index
    %20 = vector.load %arg6[%c0_12, %c192] : memref<22x704xf32, #tpu.memory_space<vmem>>, vector<16x512xf32>
    %c2 = arith.constant 2 : index
    %c0_13 = arith.constant 0 : index
    %21 = vector.load %arg2[%c2, %c0_13] : memref<9x512xf32, #tpu.memory_space<vmem>>, vector<1x512xf32>
    %22 = vector.shape_cast %21 : vector<1x512xf32> to vector<512xf32>
    %23 = vector.shape_cast %22 : vector<512xf32> to vector<1x512xf32>
    %24 = vector.broadcast %23 : vector<1x512xf32> to vector<16x512xf32>
    %25 = arith.mulf %20, %24 : vector<16x512xf32>
    %26 = arith.addf %19, %25 : vector<16x512xf32>
    %c3_14 = arith.constant 3 : index
    %c0_15 = arith.constant 0 : index
    %27 = vector.load %arg6[%c3_14, %c0_15] : memref<22x704xf32, #tpu.memory_space<vmem>>, vector<16x512xf32>
    %c3_16 = arith.constant 3 : index
    %c0_17 = arith.constant 0 : index
    %28 = vector.load %arg2[%c3_16, %c0_17] : memref<9x512xf32, #tpu.memory_space<vmem>>, vector<1x512xf32>
    %29 = vector.shape_cast %28 : vector<1x512xf32> to vector<512xf32>
    %30 = vector.shape_cast %29 : vector<512xf32> to vector<1x512xf32>
    %31 = vector.broadcast %30 : vector<1x512xf32> to vector<16x512xf32>
    %32 = arith.mulf %27, %31 : vector<16x512xf32>
    %33 = arith.addf %26, %32 : vector<16x512xf32>
    %c3_18 = arith.constant 3 : index
    %c96_19 = arith.constant 96 : index
    %34 = vector.load %arg6[%c3_18, %c96_19] : memref<22x704xf32, #tpu.memory_space<vmem>>, vector<16x512xf32>
    %c4 = arith.constant 4 : index
    %c0_20 = arith.constant 0 : index
    %35 = vector.load %arg2[%c4, %c0_20] : memref<9x512xf32, #tpu.memory_space<vmem>>, vector<1x512xf32>
    %36 = vector.shape_cast %35 : vector<1x512xf32> to vector<512xf32>
    %37 = vector.shape_cast %36 : vector<512xf32> to vector<1x512xf32>
    %38 = vector.broadcast %37 : vector<1x512xf32> to vector<16x512xf32>
    %39 = arith.mulf %34, %38 : vector<16x512xf32>
    %40 = arith.addf %33, %39 : vector<16x512xf32>
    %c3_21 = arith.constant 3 : index
    %c192_22 = arith.constant 192 : index
    %41 = vector.load %arg6[%c3_21, %c192_22] : memref<22x704xf32, #tpu.memory_space<vmem>>, vector<16x512xf32>
    %c5 = arith.constant 5 : index
    %c0_23 = arith.constant 0 : index
    %42 = vector.load %arg2[%c5, %c0_23] : memref<9x512xf32, #tpu.memory_space<vmem>>, vector<1x512xf32>
    %43 = vector.shape_cast %42 : vector<1x512xf32> to vector<512xf32>
    %44 = vector.shape_cast %43 : vector<512xf32> to vector<1x512xf32>
    %45 = vector.broadcast %44 : vector<1x512xf32> to vector<16x512xf32>
    %46 = arith.mulf %41, %45 : vector<16x512xf32>
    %47 = arith.addf %40, %46 : vector<16x512xf32>
    %c6 = arith.constant 6 : index
    %c0_24 = arith.constant 0 : index
    %48 = vector.load %arg6[%c6, %c0_24] : memref<22x704xf32, #tpu.memory_space<vmem>>, vector<16x512xf32>
    %c6_25 = arith.constant 6 : index
    %c0_26 = arith.constant 0 : index
    %49 = vector.load %arg2[%c6_25, %c0_26] : memref<9x512xf32, #tpu.memory_space<vmem>>, vector<1x512xf32>
    %50 = vector.shape_cast %49 : vector<1x512xf32> to vector<512xf32>
    %51 = vector.shape_cast %50 : vector<512xf32> to vector<1x512xf32>
    %52 = vector.broadcast %51 : vector<1x512xf32> to vector<16x512xf32>
    %53 = arith.mulf %48, %52 : vector<16x512xf32>
    %54 = arith.addf %47, %53 : vector<16x512xf32>
    %c6_27 = arith.constant 6 : index
    %c96_28 = arith.constant 96 : index
    %55 = vector.load %arg6[%c6_27, %c96_28] : memref<22x704xf32, #tpu.memory_space<vmem>>, vector<16x512xf32>
    %c7 = arith.constant 7 : index
    %c0_29 = arith.constant 0 : index
    %56 = vector.load %arg2[%c7, %c0_29] : memref<9x512xf32, #tpu.memory_space<vmem>>, vector<1x512xf32>
    %57 = vector.shape_cast %56 : vector<1x512xf32> to vector<512xf32>
    %58 = vector.shape_cast %57 : vector<512xf32> to vector<1x512xf32>
    %59 = vector.broadcast %58 : vector<1x512xf32> to vector<16x512xf32>
    %60 = arith.mulf %55, %59 : vector<16x512xf32>
    %61 = arith.addf %54, %60 : vector<16x512xf32>
    %c6_30 = arith.constant 6 : index
    %c192_31 = arith.constant 192 : index
    %62 = vector.load %arg6[%c6_30, %c192_31] : memref<22x704xf32, #tpu.memory_space<vmem>>, vector<16x512xf32>
    %c8 = arith.constant 8 : index
    %c0_32 = arith.constant 0 : index
    %63 = vector.load %arg2[%c8, %c0_32] : memref<9x512xf32, #tpu.memory_space<vmem>>, vector<1x512xf32>
    %64 = vector.shape_cast %63 : vector<1x512xf32> to vector<512xf32>
    %65 = vector.shape_cast %64 : vector<512xf32> to vector<1x512xf32>
    %66 = vector.broadcast %65 : vector<1x512xf32> to vector<16x512xf32>
    %67 = arith.mulf %62, %66 : vector<16x512xf32>
    %68 = arith.addf %61, %67 : vector<16x512xf32>
    %c0_33 = arith.constant 0 : index
    %c0_34 = arith.constant 0 : index
    %69 = vector.load %arg3[%c0_33, %c0_34] : memref<1x512xf32, #tpu.memory_space<vmem>>, vector<1x512xf32>
    %70 = vector.shape_cast %69 : vector<1x512xf32> to vector<512xf32>
    %71 = vector.shape_cast %70 : vector<512xf32> to vector<1x512xf32>
    %72 = vector.broadcast %71 : vector<1x512xf32> to vector<16x512xf32>
    %73 = arith.mulf %68, %72 : vector<16x512xf32>
    %c0_35 = arith.constant 0 : index
    %c0_36 = arith.constant 0 : index
    %74 = vector.load %arg4[%c0_35, %c0_36] : memref<1x512xf32, #tpu.memory_space<vmem>>, vector<1x512xf32>
    %75 = vector.shape_cast %74 : vector<1x512xf32> to vector<512xf32>
    %76 = vector.shape_cast %75 : vector<512xf32> to vector<1x512xf32>
    %77 = vector.broadcast %76 : vector<1x512xf32> to vector<16x512xf32>
    %78 = arith.addf %73, %77 : vector<16x512xf32>
    %cst_37 = arith.constant 0.000000e+00 : f32
    %79 = vector.broadcast %cst_37 : f32 to vector<16x512xf32>
    %80 = arith.maximumf %78, %79 : vector<16x512xf32>
    %c0_38 = arith.constant 0 : index
    %c0_39 = arith.constant 0 : index
    %c0_40 = arith.constant 0 : index
    %81 = vector.load %arg5[%c0_38, %c0_39, %c0_40] : memref<1x16x512xf32, #tpu.memory_space<vmem>>, vector<1x16x512xf32>
    %82 = vector.shape_cast %81 : vector<1x16x512xf32> to vector<16x512xf32>
    %83 = vector.shape_cast %80 : vector<16x512xf32> to vector<1x16x512xf32>
    tpu.vector_store %arg5[%c0_38, %c0_39, %c0_40], %83 {strides = array<i32>} : memref<1x16x512xf32, #tpu.memory_space<vmem>>, vector<1x16x512xf32>,
    return
  }
  func.func @transform_0(%arg0: i32) -> (i32, i32, i32) {
    %c0_i32 = arith.constant 0 : i32
    %c0_i32_0 = arith.constant 0 : i32
    %c0_i32_1 = arith.constant 0 : i32
    return %arg0, %c0_i32, %c0_i32_0 : i32, i32, i32
  }
  func.func @transform_1(%arg0: i32) -> (i32, i32) {
    %c0_i32 = arith.constant 0 : i32
    %c0_i32_0 = arith.constant 0 : i32
    %c0_i32_1 = arith.constant 0 : i32
    return %c0_i32, %c0_i32_0 : i32, i32
  }
  func.func @transform_2(%arg0: i32) -> (i32, i32) {
    %c0_i32 = arith.constant 0 : i32
    %c0_i32_0 = arith.constant 0 : i32
    %c0_i32_1 = arith.constant 0 : i32
    return %c0_i32, %c0_i32_0 : i32, i32
  }
  func.func @transform_3(%arg0: i32) -> (i32, i32) {
    %c0_i32 = arith.constant 0 : i32
    %c0_i32_0 = arith.constant 0 : i32
    %c0_i32_1 = arith.constant 0 : i32
    return %c0_i32, %c0_i32_0 : i32, i32
  }
  func.func @transform_4(%arg0: i32) -> (i32, i32, i32) {
    %c0_i32 = arith.constant 0 : i32
    %c0_i32_0 = arith.constant 0 : i32
    %c0_i32_1 = arith.constant 0 : i32
    return %arg0, %c0_i32, %c0_i32_0 : i32, i32, i32
  }
}

</mosaic_0001>

<bundles_post_ra>
// kernel: tpu_custom_call.1
= control target key start
LH: loop header
LB: loop body
LE: loop exit
PB: predicated region body
PF: predicated region fallthrough
CT: control target
= control target key end

     0   :  { %9 = vsyncpa [#allocation4], 0  ;;  %s2816_s0 = inlined_call_operand.hbm [shape: f32[2,16,512], index: 0, kind: input, shape index: {}]   ;;  %s2817_s1 = inlined_call_operand.hbm [shape: f32[9,512], index: 1, kind: input, shape index: {}]   ;;  %s2818_s2 = inlined_call_operand.hbm [shape: f32[1,512], index: 2, kind: input, shape index: {}]   ;;  %s2819_s3 = inlined_call_operand.vmem [shape: f32[1,512], index: 3, kind: input, shape index: {}]   ;;  %s2820_s4 = inlined_call_operand.hbm [shape: f32[2,16,512], index: 4, kind: output, shape index: {}]  }
   0x1   :  { %11 = vsyncpa [#allocation4 + $0x1], 0 }
   0x2   :  { %12 = vsyncpa [#allocation7], 0 }
   0x3   :  { %13 = vsyncpa [#allocation5], 0 }
   0x4   :  { %15 = vsyncpa [#allocation5 + $0x1], 0  ;;  %s1800_s15 = smov 0   ;;  %s1802_s16 = smov 0  }
   0x5   :  { %s1804_s17 = smov 0   ;;  %s1806_s18 = smov 0  }
   0x6 LB: > { %s1821_s19 = sadd.s32 4294967295, %s1762_s18   ;;  %s1520_s20 = sadd.s32 4294967294, %s1762_s18   ;;  %s1762_s18 = sphi %s1806_s18, %s2927_s18   ;;  %s1758_s17 = sphi %s1804_s17, %s2926_s17   ;;  %s1754_s16 = sphi %s1802_s16, %s2925_s16   ;;  %s1750_s15 = sphi %s1800_s15, %s2924_s15  }
   0x7   : > { %p41_p0 = scmp.ne.s32.totalorder %s1754_s16, %s1750_s15  ;;  %p2821_p1 = scmp.eq.s32.totalorder %s1821_s19, 0 }
   0x8   : > { %p128_p2 = scmp.eq.s32.totalorder %s1821_s19, 1  ;;  %p134_p3 = scmp.eq.s32.totalorder %s1520_s20, 1 }
   0x9   : > { %p1830_p4 = por %p2821_p1, %p41_p0  ;;  %p1521_p5 = scmp.ge.s32.totalorder %s1762_s18, 1 }
   0xa   : > { %p1835_p6 = por %p134_p3, %p41_p0  ;;  %p141_p7 = scmp.lt.s32.totalorder %s1762_s18, 3 }
   0xb   : > { %s2848_s21 = scalar_select %p1830_p4, 1, 0 }
   0xc   : > { %s2849_s22 = scalar_select %p1835_p6, 1, 0 }
   0xd   : > { %p1840_p8 = pnand %p1521_p5, %p141_p7  ;;  %s1764_s24 = smov [#allocation6]  }
   0xe   : > { %s153_s25 = sshll.u32 %s1764_s24, 4  ;;  %s1765_s27 = smov [#allocation8]   ;;  %s154_s25 = int_to_ptr.vmem [resolvable:$true] %s153_s25 }
   0xf   : > { %s2850_s23 = scalar_select %p1840_p8, 1, 0 }
  0x10   : > { %p1552_p9 = pneg %p1840_p8  ;;  %s167_s28 = sshll.u32 %s1765_s27, 4  ;;  %s168_s28 = int_to_ptr.vmem [resolvable:$true] %s167_s28 }
  0x11   : > { %s1625_s29 = scalar_lea.vmem %s154_s25, 1024  ;;  %p1633_p5 = scmp.lt.s32.totalorder %s154_s25, %s154_s25 }
  0x12   : > { %p1849_p11 = pnand %p1552_p9, %p2821_p1  ;;  %p1626_p13 = scmp.ne.s32.totalorder %s154_s25, %s1625_s29 }
  0x13   : > { %p1634_p7 = scmp.lt.s32.totalorder %s1625_s29, %s1625_s29 }
  0x14   : > { %p1616_p12 = pneg %p1849_p11 }
  0x15   : > { %p1635_p10 = por %p1634_p7, %p1633_p5 }
  0x16   : > { %p1628_p0 = pnand %p1626_p13, %p1616_p12 }
  0x18   : > { %p1629_p3 = pneg %p1628_p0 }
  0x1a   : > { %p1636_p9 = pnand %p1635_p10, %p1629_p3 }
  0x1c   : > { %1639 = shalt.err (!%p1636_p9)
}
  0x1d   : > { %s1766_s30 = smov 512   ;;  %s1767_s5 = smov 32  }
  0x1e   : > { %1555 = dma.hbm_to_vmem [thread:$0]  (!%p1849_p11), %s2817_s1, 1024, %s154_s25, [#allocation7], %s1766_s30, %s1766_s30, %s1767_s5  }
  0x1f   : > { %s1651_s8 = scalar_lea.vmem %s168_s28, 64  ;;  %p1659_p10 = scmp.lt.s32.totalorder %s168_s28, %s168_s28 }
  0x20   : > { %p1652_p13 = scmp.ne.s32.totalorder %s168_s28, %s1651_s8  ;;  %p1660_p3 = scmp.lt.s32.totalorder %s1651_s8, %s1651_s8 }
  0x22   : > { %p1654_p0 = pnand %p1652_p13, %p1616_p12  ;;  %p1661_p7 = por %p1660_p3, %p1659_p10 }
  0x24   : > { %p1655_p5 = pneg %p1654_p0 }
  0x26   : > { %p1662_p9 = pnand %p1661_p7, %p1655_p5 }
  0x28   : > { %1665 = shalt.err (!%p1662_p9)
}
  0x29   : > { %1558 = dma.hbm_to_vmem [thread:$0]  (!%p1849_p11), %s2818_s2, 64, %s168_s28, [#allocation7]  }
  0x2a   : > { %s1875_s11 = sadd.s32 1, %s1762_s18   ;;  %s28_s12 = sadd.s32 1, %s1758_s17 }
  0x2b   : > { %s25_s13 = ssub.s32 %s1762_s18, %s1875_s11  ;;  %p35_p12 = scmp.ne.s32.totalorder %s1758_s17, %s1754_s16 }
  0x2c   : > { %p26_p13 = scmp.eq.s32.totalorder %s25_s13, 0  ;;  %p36_p0 = scmp.eq.s32.totalorder %s1762_s18, 0 }
  0x2d   : > { %p1885_p5 = por %p128_p2, %p35_p12  ;;  %p1569_p10 = scmp.lt.s32.totalorder %s1762_s18, 2 }
  0x2e   : > { %s1891_s20 = scalar_select %p26_p13, %s1758_s17, %s28_s12  }
  0x2f   : > { %s2852_s14 = scalar_select %p1885_p5, 1, 0 }
  0x30   : > { %p37_p3 = por %p36_p0, %p35_p12  ;;  %s181_s24 = sand.u32 1, %s1758_s17  }
  0x31   : > { %s1525_s25 = sshll.u32 %s181_s24, 6  ;;  %s1538_s26 = sshll.u32 %s1762_s18, 10 }
  0x32   : > { %s1898_s29 = scalar_lea.hbm %s2816_s0, %s1538_s26  ;;  %s185_s6 = scalar_lea.vmem [#allocation3], %s1525_s25 }
  0x33   : > { %s192_s7 = sshll.u32 %s185_s6, 4  ;;  %p1902_p2 = pnand %p1569_p10, %p37_p3  ;;  %s1900_s7 = int_to_ptr.vmem [resolvable:$true] %s192_s7 }
  0x34   : > { %s1906_s9 = scalar_lea.sflag [#allocation4], %s181_s24  ;;  %s1666_s10 = scalar_lea.hbm %s1898_s29, 1024 }
  0x35   : > { %p1667_p11 = scmp.ne.s32.totalorder %s1898_s29, %s1666_s10  ;;  %p1668_p7 = pneg %p1902_p2 }
  0x36   : > { %s1671_s25 = scalar_lea.hbm %s2816_s0, 2048  ;;  %p1672_p13 = scmp.lt.s32.totalorder %s1898_s29, %s2816_s0 }
  0x37   : > { %p1669_p9 = pnand %p1668_p7, %p1667_p11  ;;  %p1673_p0 = scmp.lt.s32.totalorder %s1671_s25, %s1666_s10 }
  0x39   : > { %p1670_p12 = pneg %p1669_p9  ;;  %p1674_p10 = por %p1673_p0, %p1672_p13 }
  0x3b   : > { %p1675_p3 = pnand %p1674_p10, %p1670_p12 }
  0x3d   : > { %1678 = shalt.err (!%p1675_p3)
}
  0x3e   : > { %s1679_s24 = scalar_lea.vmem %s1900_s7, 1024  ;;  %s1768_s28 = smov [#allocation3]  }
  0x3f   : > { %p1680_p1 = scmp.ne.s32.totalorder %s1900_s7, %s1679_s24  ;;  %s1684_s6 = sshll.u32 %s1768_s28, 4  ;;  %s1685_s6 = int_to_ptr.vmem [resolvable:$false] %s1684_s6 }
  0x40   : > { %s1686_s12 = scalar_lea.vmem %s1685_s6, 2048  ;;  %p1687_p9 = scmp.lt.s32.totalorder %s1900_s7, %s1685_s6 }
  0x41   : > { %p1682_p6 = pnand %p1680_p1, %p1668_p7  ;;  %p1688_p5 = scmp.lt.s32.totalorder %s1686_s12, %s1679_s24 }
  0x43   : > { %p1683_p11 = pneg %p1682_p6  ;;  %p1689_p4 = por %p1688_p5, %p1687_p9 }
  0x45   : > { %p1690_p8 = pnand %p1689_p4, %p1683_p11 }
  0x47   : > { %1693 = shalt.err (!%p1690_p8)
}
  0x48   : > { %1562 = dma.hbm_to_vmem [thread:$0]  (!%p1902_p2), %s1898_s29, 1024, %s1900_s7, %s1906_s9, %s1766_s30, %s1766_s30, %s1767_s5  }
  0x49   : > { %p2854_p1 = scmp.ne.s32.totalorder %s2850_s23, 0 }
  0x4b   : > { %204 = sbr.rel (%p2854_p1) target bundleno = 512 (0x200), region = 36 }
  0x50   : > { %s1933_s10 = sand.u32 1, %s1754_s16   ;;  %p2855_p4 = scmp.ne.s32.totalorder %s2848_s21, 0 }
  0x51   : > { %s1529_s13 = sshll.u32 %s1933_s10, 6  ;;  %s207_s25 = scalar_lea.sflag [#allocation4], %s1933_s10 }
  0x52   : > { %s1939_s8 = scalar_lea.vmem [#allocation3], %s1529_s13 }
  0x53   : > { %1737 = dma.done.wait (%p2855_p4), %s207_s25, 1024  }
  0x54   : > { %1739 = vsyncadd (%p2855_p4), %s207_s25, 4294966272  ;;  %p2856_p6 = scmp.eq.s32.totalorder %s1821_s19, 0 }
  0x56   : > { %1741 = dma.done.wait (%p2856_p6), [#allocation7], 1088   ;;  %p2857_p8 = pmov %p2856_p6 }
  0x57   : > { %v1769_v0 = vmov 0.0   ;;  %v265_v1 = vld [vmem:[%s1939_s8 + $0x10] sm:$0xff]  ;;  %v263_v2 = vld [vmem:[%s1939_s8] sm:$0xff]  ;;  %v266_v3 = vld [vmem:[%s1939_s8 + $0x18] sm:$0xff]  ;;  %s1770_s21 = smov 96   ;;  %vm279_vm0 = vcmask 1042432   ;;  %v371_v19 = vlaneseq }
  0x58   : > { %1743 = vsyncadd (%p2857_p8), [#allocation7], 4294966208  ;;  %243 = vst [vmem:[#allocation2] sm:$0xff] %v1769_v0  ;;  %v282_v4 = vrot.slane %v265_v1, 5  ;;  %v280_v5 = vrot.slane %v263_v2, 5  ;;  %v264_v6 = vld [vmem:[%s1939_s8 + $0x8] sm:$0xff] }
  0x59   : > { %244 = vst [vmem:[#allocation2 + $0x8] sm:$0xff] %v1769_v0  ;;  %245 = vst [vmem:[#allocation2 + $0x10] sm:$0xff] %v1769_v0  ;;  %v268_v7 = vld [vmem:[%s1939_s8 + $0x28] sm:$0xff]  ;;  %v267_v8 = vld [vmem:[%s1939_s8 + $0x20] sm:$0xff]  ;;  %v283_v9 = vrot.slane %v266_v3, 5  ;;  %v281_v10 = vrot.slane %v264_v6, 5 }
  0x5a   : > { %246 = vst [vmem:[#allocation2 + $0x18] sm:$0xff] %v1769_v0  ;;  %247 = vst [vmem:[#allocation2 + $0x20] sm:$0xff] %v1769_v0  ;;  %296 = vrot.lane.b32.xlu1 %v282_v4, %s1770_s21  ;;  %292 = vrot.lane.b32.xlu0 %v280_v5, %s1770_s21  ;;  %v286_v11 = vrot.slane %v268_v7, 5  ;;  %v284_v12 = vrot.slane %v267_v8, 5  ;;  %v270_v13 = vld [vmem:[%s1939_s8 + $0x38] sm:$0xff]  ;;  %v269_v14 = vld [vmem:[%s1939_s8 + $0x30] sm:$0xff] }
  0x5b   : > { %250 = vst [vmem:[#allocation2 + $0x30] sm:$0xff] %v1769_v0  ;;  %254 = vst [vmem:[#allocation2 + $0x50] sm:$0xff] %v1769_v0  ;;  %v290_v17 = vrot.slane %v270_v13, 5  ;;  %v288_v18 = vrot.slane %v269_v14, 5  ;;  %v372_v22 = vshrl.u32 %v371_v19, 7  ;;  %vm248_vm1 = vcmask 523264  }
  0x5c   : > { %256 = vst [vmem:[#allocation2 + $0x60] sm:$0x3f] %v1769_v0  ;;  %257 = vst [vmem:[#allocation2 + $0x68] sm:$0x3f] %v1769_v0  ;;  %v287_v15 = vsel %vm279_vm0, %v281_v10, %v286_v11  ;;  %v285_v16 = vsel %vm279_vm0, %v280_v5, %v284_v12  ;;  %s1771_s23 = smov 64   ;;  %vm261_vm2 = vcmask 521216  }
  0x5d   : > { %258 = vst [vmem:[#allocation2 + $0x70] sm:$0x3f] %v1769_v0  ;;  %259 = vst [vmem:[#allocation2 + $0x78] sm:$0x3f] %v1769_v0  ;;  %v291_v20 = vsel %vm279_vm0, %v283_v9, %v290_v17  ;;  %v289_v21 = vsel %vm279_vm0, %v282_v4, %v288_v18  ;;  %v1983_v23 = vsub.s32 1, %v372_v22  ;;  %v1985_v24 = vsub.s32 0, %v372_v22 }
  0x5e   : > { %260 = vst [vmem:[#allocation2 + $0x80] sm:$0x3f] %v1769_v0  ;;  %298 = vrot.lane.b32.xlu1 %v283_v9, %s1770_s21  ;;  %294 = vrot.lane.b32.xlu0 %v281_v10, %s1770_s21  ;;  %249 = vst.msk [vmem:[#allocation2 + $0x28] sm:$0xff] %vm248_vm1, %v1769_v0  ;;  %v410_v25 = vld [vmem:[#allocation6 + $0x1] ss:$8 sm:$0xf] }
  0x5f   : > { %255 = vst.msk [vmem:[#allocation2 + $0x58] sm:$0xff] %vm248_vm1, %v1769_v0  ;;  %2858 = vst [vmem:[#allocation13_spill] sm:$0xff] %v1983_v23  ;;  %v419_v26 = vrot.slane %v410_v25, %v1983_v23  ;;  %v415_v27 = vrot.slane %v410_v25, %v1985_v24  ;;  %v1991_v28 = vsub.s32 3, %v372_v22  ;;  %v1993_v29 = vsub.s32 2, %v372_v22  ;;  %s1772_s30 = smov 32   ;;  %s2746_s7 = scalar_lea.vmem [#allocation9], %s1529_s13 }
  0x60   : > { %2859 = vst [vmem:[#allocation14_spill] sm:$0xff] %v1985_v24  ;;  %v512_v32 = vld [vmem:[#allocation6 + $0x2] ss:$8 sm:$0xf]  ;;  %262 = vst.msk [vmem:[#allocation2 + $0x88] sm:$0x3f] %vm261_vm2, %v1769_v0 }
  0x61   : > { %2860 = vst [vmem:[#allocation15_spill] sm:$0xff] %v1991_v28  ;;  %2861 = vst [vmem:[#allocation16_spill] sm:$0xff] %v1993_v29  ;;  %v427_v30 = vrot.slane %v410_v25, %v1991_v28  ;;  %v423_v31 = vrot.slane %v410_v25, %v1993_v29  ;;  %v521_v33 = vrot.slane %v512_v32, %v1983_v23  ;;  %v705_v37 = vld [vmem:[#allocation6 + $0x4] ss:$8 sm:$0xf]  ;;  %vm341_vm3 = vcmask 1048323  }
  0x62   : > { %302 = vrot.lane.b32.xlu1 %v287_v15, %s1770_s21  ;;  %300 = vrot.lane.b32.xlu0 %v285_v16, %s1770_s21  ;;  %v517_v34 = vrot.slane %v512_v32, %v1985_v24  ;;  %v529_v35 = vrot.slane %v512_v32, %v1991_v28  ;;  %v525_v36 = vrot.slane %v512_v32, %v1993_v29  ;;  %v841_v42 = vld [vmem:[#allocation6 + $0x5] ss:$8 sm:$0xf]  ;;  %v1069_v47 = vld [vmem:[#allocation6 + $0x7] ss:$8 sm:$0xf] }
  0x63   : > { %v714_v38 = vrot.slane %v705_v37, %v1983_v23  ;;  %v710_v39 = vrot.slane %v705_v37, %v1985_v24  ;;  %v722_v40 = vrot.slane %v705_v37, %v1991_v28  ;;  %v718_v41 = vrot.slane %v705_v37, %v1993_v29  ;;  %v1205_v52 = vld [vmem:[#allocation6 + $0x20] ss:$8 sm:$0xf]  ;;  %v619_v59 = vld [vmem:[#allocation6 + $0x3] ss:$8 sm:$0xf] }
  0x64   : > { %v850_v43 = vrot.slane %v841_v42, %v1983_v23  ;;  %v846_v44 = vrot.slane %v841_v42, %v1985_v24  ;;  %v858_v45 = vrot.slane %v841_v42, %v1991_v28  ;;  %v854_v46 = vrot.slane %v841_v42, %v1993_v29  ;;  %v983_v63 = vld [vmem:[#allocation6 + $0x6] ss:$8 sm:$0xf]  ;;  %s1539_s9 = sshll.u32 %s1821_s19, 10  ;;  %s1428_s26 = sshll.u32 %s2746_s7, 4  ;;  %s2770_s26 = int_to_ptr.vmem [resolvable:$true] %s1428_s26 }
  0x65   : > { %v1078_v48 = vrot.slane %v1069_v47, %v1983_v23  ;;  %v1074_v49 = vrot.slane %v1069_v47, %v1985_v24  ;;  %v1086_v50 = vrot.slane %v1069_v47, %v1991_v28  ;;  %v1082_v51 = vrot.slane %v1069_v47, %v1993_v29  ;;  %s2768_s28 = scalar_lea.hbm %s2820_s4, %s1539_s9  ;;  %s1415_s19 = scalar_lea.sflag [#allocation5], %s1933_s10 }
  0x66   : > { %306 = vrot.lane.b32.xlu1 %v291_v20, %s1770_s21  ;;  %304 = vrot.lane.b32.xlu0 %v289_v21, %s1770_s21  ;;  %v1214_v53 = vrot.slane %v1205_v52, %v1983_v23  ;;  %v1210_v54 = vrot.slane %v1205_v52, %v1985_v24  ;;  %v1222_v55 = vrot.slane %v1205_v52, %v1991_v28  ;;  %vm316_vm4 = vcmask 785408   ;;  %s1694_s6 = scalar_lea.vmem %s2770_s26, 1024  ;;  %p2921_p2 = scmp.ne.s32.totalorder %s2852_s14, 0 }
  0x67   : > { %v1218_v56 = vrot.slane %v1205_v52, %v1993_v29  ;;  %vm346_vm5 = vcmask 785411   ;;  %v2043_v62 = vrot.slane %v619_v59, %v1985_v24  ;;  %v2049_v3 = vrot.slane %v983_v63, %v1985_v24  ;;  %p1695_p5 = scmp.ne.s32.totalorder %s2770_s26, %s1694_s6  ;;  %s1773_s12 = smov [#allocation9]  }
  0x68   : > { %vm348_vm6 = vcmask 1048320   ;;  %v2054_v7 = vrot.slane %v619_v59, %v1983_v23  ;;  %v2059_v9 = vrot.slane %v983_v63, %v1983_v23  ;;  %vm354_vm7 = vcmask 1043200   ;;  %s1698_s13 = sshll.u32 %s1773_s12, 4  ;;  %s1699_s13 = int_to_ptr.vmem [resolvable:$false] %s1698_s13 }
  0x69   : > { %vm359_vm8 = vcmask 780288   ;;  %v2073_v13 = vrot.slane %v619_v59, %v1993_v29  ;;  %v2076_v14 = vrot.slane %v619_v59, %v1991_v28  ;;  %vm665_vm9 = vcmask 1044480   ;;  %p1696_p7 = pnand %p1695_p5, %p2921_p2  ;;  %s1700_s25 = scalar_lea.vmem %s1699_s13, 2048 }
  0x6a   : > { %310 = vrot.lane.b32.xlu1 %v286_v11, %s1770_s21  ;;  %308 = vrot.lane.b32.xlu0 %v284_v12, %s1770_s21  ;;  %v2079_v15 = vrot.slane %v983_v63, %v1993_v29  ;;  %vm1029_vm10 = vcmask 1041408   ;;  %vm484_vm11 = vcmask 261120   ;;  %p1701_p13 = scmp.lt.s32.totalorder %s2770_s26, %s1699_s13  ;;  %p1702_p0 = scmp.lt.s32.totalorder %s1700_s25, %s1694_s6 }
  0x6b   : > { %p1697_p12 = pneg %p1696_p7 }
  0x6c   : > { %p1703_p10 = por %p1702_p0, %p1701_p13 }
  0x6e   : > { %314 = vrot.lane.b32.xlu1 %v290_v17, %s1770_s21  ;;  %312 = vrot.lane.b32.xlu0 %v288_v18, %s1770_s21  ;;  %v2082_v18 = vrot.slane %v983_v63, %v1991_v28  ;;  %p1704_p3 = pnand %p1703_p10, %p1697_p12 }
  0x72   : > { %430 = vrot.lane.b32.xlu1 %v419_v26, %s1770_s21  ;;  %428 = vrot.lane.b32.xlu0 %v415_v27, %s1770_s21 }
  0x76   : > { %434 = vrot.lane.b32.xlu1 %v427_v30, %s1770_s21  ;;  %432 = vrot.lane.b32.xlu0 %v423_v31, %s1770_s21 }
  0x7a   : > { %532 = vrot.lane.b32.xlu1 %v521_v33, %s1771_s23  ;;  %530 = vrot.lane.b32.xlu0 %v517_v34, %s1771_s23 }
  0x7e   : > { %536 = vrot.lane.b32.xlu1 %v529_v35, %s1771_s23  ;;  %534 = vrot.lane.b32.xlu0 %v525_v36, %s1771_s23 }
  0x82   : > { %725 = vrot.lane.b32.xlu1 %v714_v38, %s1770_s21  ;;  %723 = vrot.lane.b32.xlu0 %v710_v39, %s1770_s21 }
  0x86   : > { %729 = vrot.lane.b32.xlu1 %v722_v40, %s1770_s21  ;;  %727 = vrot.lane.b32.xlu0 %v718_v41, %s1770_s21 }
  0x8a   : > { %861 = vrot.lane.b32.xlu1 %v850_v43, %s1771_s23  ;;  %859 = vrot.lane.b32.xlu0 %v846_v44, %s1771_s23 }
  0x8e   : > { %865 = vrot.lane.b32.xlu1 %v858_v45, %s1771_s23  ;;  %863 = vrot.lane.b32.xlu0 %v854_v46, %s1771_s23 }
  0x92   : > { %1089 = vrot.lane.b32.xlu1 %v1078_v48, %s1770_s21  ;;  %1087 = vrot.lane.b32.xlu0 %v1074_v49, %s1770_s21 }
  0x96   : > { %1093 = vrot.lane.b32.xlu1 %v1086_v50, %s1770_s21  ;;  %1091 = vrot.lane.b32.xlu0 %v1082_v51, %s1770_s21 }
  0x9a   : > { %1225 = vrot.lane.b32.xlu1 %v1214_v53, %s1771_s23  ;;  %1223 = vrot.lane.b32.xlu0 %v1210_v54, %s1771_s23 }
  0x9e   : > { %1229 = vrot.lane.b32.xlu1 %v1222_v55, %s1771_s23  ;;  %1227 = vrot.lane.b32.xlu0 %v1218_v56, %s1771_s23 }
  0xcc   : > { %v297_v57 = vpop.permute.xlu1 %296  ;;  %v293_v58 = vpop.permute.xlu0 %292 }
  0xcd   : > { %342 = vst.msk [vmem:[#allocation2] sm:$0xf8] %vm341_vm3, %v293_v58 }
  0xd0   : > { %v299_v60 = vpop.permute.xlu1 %298  ;;  %v295_v61 = vpop.permute.xlu0 %294 }
  0xd1   : > { %v319_v0 = vsel %vm316_vm4, %v297_v57, %v299_v60  ;;  %347 = vst.msk [vmem:[#allocation2 + $0x20] sm:$0xf8] %vm346_vm5, %v299_v60  ;;  %v317_v1 = vsel %vm316_vm4, %v293_v58, %v295_v61  ;;  %v318_v2 = vsel %vm316_vm4, %v295_v61, %v297_v57 }
  0xd2   : > { %345 = vst [vmem:[#allocation2 + $0x18] sm:$0xf8] %v319_v0  ;;  %343 = vst [vmem:[#allocation2 + $0x8] sm:$0xf8] %v317_v1 }
  0xd3   : > { %344 = vst [vmem:[#allocation2 + $0x10] sm:$0xf8] %v318_v2 }
  0xd4   : > { %v303_v4 = vpop.permute.xlu1 %302  ;;  %v301_v5 = vpop.permute.xlu0 %300  ;;  %v2051_v6 = vld [vmem:[#allocation2] sm:$0xf8] }
  0xd5   : > { %v2056_v8 = vld [vmem:[#allocation2] sm:$0xc0]  ;;  %v2062_v10 = vsel %vm316_vm4, %v301_v5, %v303_v4  ;;  %349 = vst.msk [vmem:[#allocation2 + $0x30] sm:$0xff] %vm348_vm6, %v301_v5  ;;  %v2066_v11 = vmul.f32 %v2043_v62, %v2051_v6 }
  0xd6   : > { %2862 = vst [vmem:[#allocation17_spill] sm:$0xff] %v2056_v8  ;;  %v2070_v12 = vmul.f32 %v2049_v3, %v2056_v8  ;;  %v2086_v19 = vmul.f32 %v2054_v7, %v2062_v10  ;;  %v2090_v20 = vmul.f32 %v2059_v9, %v2062_v10  ;;  %v2351_v29 = vld [vmem:[#allocation2] sm:$0xff] }
  0xd7   : > { %v666_v25 = vrot.slane %v2066_v11, 3  ;;  %2886 = vst [vmem:[#allocation39_spill] sm:$0xff] %v2351_v29 }
  0xd8   : > { %v307_v16 = vpop.permute.xlu1 %306  ;;  %v305_v17 = vpop.permute.xlu0 %304  ;;  %v1030_v26 = vrot.slane %v2070_v12, 6  ;;  %v670_v44 = vrot.slane %v2086_v19, 3  ;;  %v2826_v48 = vrot.slane %v2090_v20, 6 }
  0xd9   : > { %353 = vst.msk [vmem:[#allocation2 + $0x50] sm:$0xff] %vm316_vm4, %v307_v16  ;;  %v2094_v21 = vsel %vm316_vm4, %v303_v4, %v305_v17  ;;  %v2097_v22 = vsel %vm316_vm4, %v305_v17, %v307_v16  ;;  %v2103_v30 = vld [vmem:[#allocation2 + $0x18] sm:$0xf8]  ;;  %v2105_v31 = vld [vmem:[#allocation2 + $0x8] sm:$0xf8] }
  0xda   : > { %v2101_v27 = vld [vmem:[#allocation2 + $0x10] sm:$0xf8]  ;;  %v644_v33 = vmul.f32 %v2076_v14, %v2103_v30  ;;  %v642_v34 = vmul.f32 %v2054_v7, %v2105_v31  ;;  %v2115_v36 = vld [vmem:[#allocation2 + $0x18] sm:$0xc0]  ;;  %v2117_v37 = vld [vmem:[#allocation2 + $0x8] sm:$0xc0]  ;;  %v2127_v43 = vmul.f32 %v2076_v14, %v2097_v22  ;;  %v2140_v53 = vmul.f32 %v2073_v13, %v2094_v21 }
  0xdb   : > { %v643_v32 = vmul.f32 %v2073_v13, %v2101_v27  ;;  %v2113_v35 = vld [vmem:[#allocation2 + $0x10] sm:$0xc0]  ;;  %2863 = vst [vmem:[#allocation18_spill] sm:$0xff] %v2115_v36  ;;  %v1006_v42 = vmul.f32 %v2059_v9, %v2117_v37  ;;  %v1008_v47 = vmul.f32 %v2082_v18, %v2115_v36  ;;  %v2146_v56 = vmul.f32 %v2079_v15, %v2094_v21 }
  0xdc   : > { %v311_v38 = vpop.permute.xlu1 %310  ;;  %v309_v39 = vpop.permute.xlu0 %308  ;;  %v2119_v40 = vld [vmem:[#allocation2 + $0x30] sm:$0xff]  ;;  %v1007_v41 = vmul.f32 %v2079_v15, %v2113_v35  ;;  %v675_v46 = vrot.slane %v644_v33, 3  ;;  %v2825_v52 = vrot.slane %v2127_v43, 3  ;;  %v669_v54 = vrot.slane %v642_v34, 3 }
  0xdd   : > { %v323_v45 = vsel %vm316_vm4, %v309_v39, %v311_v38  ;;  %355 = vst.msk [vmem:[#allocation2 + $0x60] sm:$0x7] %vm354_vm7, %v309_v39  ;;  %v672_v49 = vrot.slane %v643_v32, 3  ;;  %v645_v51 = vmul.f32 %v2043_v62, %v2119_v40  ;;  %v1009_v55 = vmul.f32 %v2049_v3, %v2119_v40 }
  0xde   : > { %356 = vst [vmem:[#allocation2 + $0x68] sm:$0x7] %v323_v45  ;;  %v1036_v50 = vrot.slane %v1007_v41, 6  ;;  %v2151_v60 = vsel %vm665_vm9, %v675_v46, %v2825_v52  ;;  %v1033_v61 = vrot.slane %v1006_v42, 6  ;;  %v1012_v63 = vmul.f32 %v2082_v18, %v2097_v22  ;;  %v2240_v52 = vld [vmem:[#allocation2 + $0x58] sm:$0xff] }
  0xdf   : > { %v667_v59 = vrot.slane %v645_v51, 3  ;;  %2864 = vst [vmem:[#allocation19_spill] sm:$0xff] %v2151_v60  ;;  %v2161_v2 = vsel %vm665_vm9, %v669_v54, %v670_v44  ;;  %v673_v4 = vrot.slane %v2140_v53, 3  ;;  %v1031_v11 = vrot.slane %v1009_v55, 6  ;;  %2877 = vst [vmem:[#allocation32_spill] sm:$0xff] %v2240_v52 }
  0xe0   : > { %v315_v57 = vpop.permute.xlu1 %314  ;;  %v313_v58 = vpop.permute.xlu0 %312  ;;  %2865 = vst [vmem:[#allocation20_spill] sm:$0xff] %v2161_v2  ;;  %v2170_v12 = vsel %vm1029_vm10, %v1033_v61, %v2826_v48  ;;  %v1037_v16 = vrot.slane %v2146_v56, 6  ;;  %v1039_v17 = vrot.slane %v1008_v47, 6  ;;  %v1040_v33 = vrot.slane %v1012_v63, 6 }
  0xe1   : > { %360 = vst.msk [vmem:[#allocation2 + $0x80] sm:$0x7] %vm359_vm8, %v315_v57  ;;  %v324_v0 = vsel %vm316_vm4, %v311_v38, %v313_v58  ;;  %v325_v1 = vsel %vm316_vm4, %v313_v58, %v315_v57  ;;  %v2165_v5 = vsel %vm665_vm9, %v666_v25, %v667_v59  ;;  %2867 = vst [vmem:[#allocation22_spill] sm:$0xff] %v2170_v12 }
  0xe2   : > { %357 = vst [vmem:[#allocation2 + $0x70] sm:$0x7] %v324_v0  ;;  %358 = vst [vmem:[#allocation2 + $0x78] sm:$0x7] %v325_v1  ;;  %v2174_v32 = vsel %vm665_vm9, %v672_v49, %v673_v4  ;;  %v2185_v41 = vsel %vm1029_vm10, %v1030_v26, %v1031_v11  ;;  %v2188_v42 = vsel %vm1029_vm10, %v1036_v50, %v1037_v16 }
  0xe3   : > { %2866 = vst [vmem:[#allocation21_spill] sm:$0xff] %v2165_v5  ;;  %2868 = vst [vmem:[#allocation23_spill] sm:$0xff] %v2174_v32  ;;  %v2201_v53 = vsel %vm1029_vm10, %v1039_v17, %v1040_v33 }
  0xe4   : > { %v2176_v34 = vpop.permute.xlu1 %430  ;;  %v2178_v38 = vpop.permute.xlu0 %428  ;;  %v2180_v39 = vld [vmem:[#allocation2 + $0x60] sm:$0x7]  ;;  %2870 = vst [vmem:[#allocation25_spill] sm:$0xff] %v2185_v41  ;;  %2871 = vst [vmem:[#allocation26_spill] sm:$0xff] %v2188_v42 }
  0xe5   : > { %v2182_v25 = vld [vmem:[#allocation2 + $0x60] sm:$0x3f]  ;;  %v649_v45 = vmul.f32 %v2043_v62, %v2180_v39  ;;  %v2192_v46 = vld [vmem:[#allocation2 + $0x68] sm:$0x7]  ;;  %2872 = vst [vmem:[#allocation27_spill] sm:$0xff] %v2201_v53 }
  0xe6   : > { %2869 = vst [vmem:[#allocation24_spill] sm:$0xff] %v2182_v25  ;;  %v2194_v47 = vld [vmem:[#allocation2 + $0x68] sm:$0x3f]  ;;  %v650_v49 = vmul.f32 %v2054_v7, %v2192_v46  ;;  %v1013_v51 = vmul.f32 %v2049_v3, %v2182_v25 }
  0xe7   : > { %v678_v54 = vrot.slane %v649_v45, 3  ;;  %v1014_v62 = vmul.f32 %v2059_v9, %v2194_v47 }
  0xe8   : > { %v2203_v26 = vpop.permute.xlu1 %434  ;;  %v2205_v50 = vpop.permute.xlu0 %432  ;;  %v1042_v55 = vrot.slane %v1013_v51, 6  ;;  %v680_v56 = vrot.slane %v650_v49, 3  ;;  %v509_v51 = vld [vmem:[#allocation2 + $0x28] sm:$0xff] }
  0xe9   : > { %v2209_v57 = vld [vmem:[#allocation2 + $0x70] sm:$0x7]  ;;  %v2211_v58 = vld [vmem:[#allocation2 + $0x78] sm:$0x7]  ;;  %v2230_v45 = vsel %vm665_vm9, %v667_v59, %v678_v54  ;;  %v1044_v49 = vrot.slane %v1014_v62, 6  ;;  %v2879_v59 = vrot.slane %v2090_v20, 6  ;;  %v437_v25 = vsel %vm316_vm4, %v2176_v34, %v2205_v50 }
  0xea   : > { %v2213_v7 = vld [vmem:[#allocation2 + $0x70] sm:$0x3f]  ;;  %v2215_v3 = vld [vmem:[#allocation2 + $0x78] sm:$0x3f]  ;;  %v651_v61 = vmul.f32 %v2073_v13, %v2209_v57  ;;  %v652_v63 = vmul.f32 %v2076_v14, %v2211_v58  ;;  %2874 = vst [vmem:[#allocation29_spill] sm:$0xff] %v2230_v45  ;;  %v2235_v13 = vsel %vm665_vm9, %v670_v44, %v680_v56  ;;  %v2238_v14 = vsel %vm1029_vm10, %v1031_v11, %v1042_v55 }
  0xeb   : > { %2873 = vst [vmem:[#allocation28_spill] sm:$0xff] %v2213_v7  ;;  %v1015_v0 = vmul.f32 %v2079_v15, %v2213_v7  ;;  %v1016_v9 = vmul.f32 %v2082_v18, %v2215_v3  ;;  %2875 = vst [vmem:[#allocation30_spill] sm:$0xff] %v2235_v13  ;;  %v2248_v19 = vsel %vm1029_vm10, %v2879_v59, %v1044_v49  ;;  %v2881_v11 = vrot.slane %v2127_v43, 3  ;;  %v2270_v43 = vld [vmem:[#allocation2 + $0x20] sm:$0xff] }
  0xec   : > { %v2225_v1 = vpop.permute.xlu1 %532  ;;  %v2227_v17 = vpop.permute.xlu0 %530  ;;  %2876 = vst [vmem:[#allocation31_spill] sm:$0xff] %v2238_v14  ;;  %v682_v15 = vrot.slane %v651_v61, 3  ;;  %v684_v18 = vrot.slane %v652_v63, 3  ;;  %2880 = vst [vmem:[#allocation34_spill] sm:$0xff] %v2248_v19 }
  0xed   : > { %v1046_v48 = vrot.slane %v1015_v0, 6  ;;  %v1048_v42 = vrot.slane %v1016_v9, 6 }
  0xee   : > { %v2243_v12 = vsel %vm665_vm9, %v673_v4, %v682_v15  ;;  %v2255_v55 = vsel %vm665_vm9, %v2881_v11, %v684_v18  ;;  %v2298_v11 = vsel %vm316_vm4, %v2205_v50, %v2203_v26  ;;  %v451_v50 = vmul.f32 %v437_v25, %v2094_v21 }
  0xef   : > { %2878 = vst [vmem:[#allocation33_spill] sm:$0xff] %v2243_v12  ;;  %2882 = vst [vmem:[#allocation35_spill] sm:$0xff] %v2255_v55  ;;  %v2258_v62 = vsel %vm1029_vm10, %v1037_v16, %v1046_v48  ;;  %v2261_v56 = vsel %vm1029_vm10, %v1040_v33, %v1048_v42  ;;  %v2281_v33 = vsel %vm316_vm4, %v2178_v38, %v2176_v34  ;;  %v2283_v42 = vld [vmem:[#allocation2 + $0x8] sm:$0xff] }
  0xf0   : > { %v537_v44 = vpop.permute.xlu1 %536  ;;  %v2250_v54 = vpop.permute.xlu0 %534  ;;  %2883 = vst [vmem:[#allocation36_spill] sm:$0xff] %v2258_v62  ;;  %2884 = vst [vmem:[#allocation37_spill] sm:$0xff] %v2261_v56  ;;  %v2307_v62 = vld [vmem:[#allocation2 + $0x18] sm:$0xff]  ;;  %v838_v12 = vld [vmem:[#allocation2 + $0x28] sm:$0xf8]  ;;  %v448_v34 = vmul.f32 %v2203_v26, %v2270_v43 }
  0xf1   : > { %v550_v4 = vmul.f32 %v537_v44, %v509_v51  ;;  %v555_v20 = vmul.f32 %v537_v44, %v2240_v52  ;;  %v2266_v61 = vsel %vm248_vm1, %v2250_v54, %v537_v44  ;;  %2885 = vst [vmem:[#allocation38_spill] sm:$0xff] %v2283_v42  ;;  %v445_v44 = vmul.f32 %v2281_v33, %v2283_v42 }
  0xf2   : > { %v549_v48 = vmul.f32 %v2266_v61, %v2270_v43  ;;  %v447_v45 = vmul.f32 %v2298_v11, %v2307_v62 }
  0xf3   : > { %584 = vrot.lane.b32.xlu1 %v555_v20, %s1771_s23  ;;  %574 = vrot.lane.b32.xlu0 %v550_v4, %s1771_s23 }
  0xf4   : > { %v726_v63 = vpop.permute.xlu1 %725  ;;  %v2272_v0 = vpop.permute.xlu0 %723 }
  0xf5   : > { %v731_v16 = vsel %vm316_vm4, %v2272_v0, %v726_v63 }
  0xf6   : > { %v745_v9 = vmul.f32 %v731_v16, %v2062_v10  ;;  %v740_v49 = vmul.f32 %v731_v16, %v2105_v31 }
  0xf7   : > { %572 = vrot.lane.b32.xlu1 %v549_v48, %s1771_s23 }
  0xf8   : > { %v2288_v15 = vpop.permute.xlu1 %729  ;;  %v728_v51 = vpop.permute.xlu0 %727  ;;  %v773_v56 = vrot.slane %v745_v9, 3 }
  0xf9   : > { %v732_v18 = vsel %vm316_vm4, %v726_v63, %v728_v51  ;;  %v733_v59 = vsel %vm316_vm4, %v728_v51, %v2288_v15  ;;  %v772_v51 = vrot.slane %v740_v49, 3 }
  0xfa   : > { %v742_v4 = vmul.f32 %v733_v59, %v2103_v30  ;;  %v746_v20 = vmul.f32 %v732_v18, %v2094_v21  ;;  %v2303_v48 = vmul.f32 %v733_v59, %v2097_v22  ;;  %v751_v63 = vmul.f32 %v732_v18, %v2209_v57 }
  0xfb   : > { %466 = vrot.lane.b32.xlu1 %v445_v44, %s1772_s30  ;;  %v2316_v44 = vsel %vm665_vm9, %v772_v51, %v773_v56 }
  0xfc   : > { %v776_v19 = vrot.slane %v746_v20, 3  ;;  %v778_v14 = vrot.slane %v742_v4, 3  ;;  %v2827_v41 = vrot.slane %v2303_v48, 3  ;;  %v862_v53 = vpop.permute.xlu1 %861  ;;  %v2310_v13 = vpop.permute.xlu0 %859  ;;  %v788_v55 = vrot.slane %v751_v63, 3 }
  0xfd   : > { %v741_v4 = vmul.f32 %v732_v18, %v2101_v27  ;;  %v750_v63 = vmul.f32 %v731_v16, %v2192_v46 }
  0xfe   : > { %v2321_v9 = vsel %vm665_vm9, %v778_v14, %v2827_v41  ;;  %v2324_v49 = vsel %vm665_vm9, %v776_v19, %v788_v55  ;;  %v2340_v41 = vld [vmem:[#allocation2 + $0x50] sm:$0xff] }
  0xff   : > { %470 = vrot.lane.b32.xlu1 %v447_v45, %s1772_s30  ;;  %v449_v45 = vmul.f32 %v2178_v38, %v2119_v40  ;;  %v775_v18 = vrot.slane %v741_v4, 3  ;;  %v786_v60 = vrot.slane %v750_v63, 3  ;;  %v453_v23 = vmul.f32 %v2203_v26, %v2340_v41 }
 0x100   : > { %v2327_v20 = vpop.permute.xlu1 %865  ;;  %v2329_v32 = vpop.permute.xlu0 %863  ;;  %v752_v63 = vmul.f32 %v733_v59, %v2211_v58  ;;  %v2889_v26 = vrot.slane %v2303_v48, 3  ;;  %v551_v48 = vmul.f32 %v2227_v17, %v2062_v10 }
 0x101   : > { %v879_v51 = vmul.f32 %v2327_v20, %v838_v12  ;;  %v2337_v14 = vmul.f32 %v2327_v20, %v2240_v52  ;;  %v2349_v12 = vsel %vm248_vm1, %v862_v53, %v2329_v32  ;;  %v2378_v59 = vsel %vm665_vm9, %v773_v56, %v786_v60 }
 0x102   : > { %v877_v28 = vmul.f32 %v2349_v12, %v2103_v30  ;;  %v2370_v24 = vmul.f32 %v2349_v12, %v2097_v22 }
 0x103   : > { %474 = vrot.lane.b32.xlu1 %v449_v45, %s1772_s30  ;;  %v917_v55 = vrot.slane %v879_v51, 3  ;;  %v2838_v16 = vrot.slane %v2337_v14, 3  ;;  %v2356_v45 = vsel %vm248_vm1, %v2227_v17, %v2225_v1  ;;  %v2364_v51 = vld [vmem:[#allocation2 + $0x10] sm:$0xff] }
 0x104   : > { %v1090_v2 = vpop.permute.xlu1 %1089  ;;  %v2342_v5 = vpop.permute.xlu0 %1087  ;;  %2887 = vst [vmem:[#allocation40_spill] sm:$0xff] %v2364_v51 }
 0x105   : > { %v919_v4 = vsel %vm665_vm9, %v917_v55, %v2838_v16  ;;  %v2375_v55 = vsel %vm665_vm9, %v775_v18, %v776_v19  ;;  %v547_v16 = vmul.f32 %v2356_v45, %v2364_v51  ;;  %v2844_v18 = vrot.slane %v2370_v24, 3 }
 0x106   : > { %938 = vrot.lane.b32.xlu0 %v919_v4, %s1771_s23 }
 0x107   : > { %482 = vrot.lane.b32.xlu1 %v453_v23, %s1772_s30  ;;  %v444_v23 = vmul.f32 %v2178_v38, %v2351_v29  ;;  %v790_v38 = vrot.slane %v752_v63, 3  ;;  %v2406_v63 = vmul.f32 %v2272_v0, %v2119_v40 }
 0x108   : > { %v2372_v52 = vpop.permute.xlu1 %1093  ;;  %v1092_v8 = vpop.permute.xlu0 %1091 }
 0x109   : > { %2888 = vst [vmem:[#allocation41_spill] sm:$0xff] %v2372_v52  ;;  %v1096_v4 = vsel %vm316_vm4, %v1090_v2, %v1092_v8  ;;  %v1097_v30 = vsel %vm316_vm4, %v1092_v8, %v2372_v52  ;;  %v911_v8 = vrot.slane %v877_v28, 3  ;;  %v2410_v28 = vsel %vm248_vm1, %v2310_v13, %v862_v53 }
 0x10a   : > { %v1106_v19 = vmul.f32 %v1097_v30, %v2115_v36  ;;  %v1110_v60 = vmul.f32 %v1096_v4, %v2094_v21  ;;  %v2393_v56 = vmul.f32 %v1097_v30, %v2097_v22  ;;  %464 = vrot.lane.b32.xlu0 %v444_v23, %s1772_s30  ;;  %v1095_v36 = vsel %vm316_vm4, %v2342_v5, %v1090_v2 }
 0x10b   : > { %568 = vrot.lane.b32.xlu1 %v547_v16, %s1771_s23  ;;  %v1105_v16 = vmul.f32 %v1096_v4, %v2113_v35  ;;  %v1115_v23 = vmul.f32 %v1096_v4, %v2213_v7  ;;  %v2419_v2 = vsel %vm665_vm9, %v2889_v26, %v790_v38  ;;  %v1104_v43 = vmul.f32 %v1095_v36, %v2117_v37 }
 0x10c   : > { %v1142_v29 = vrot.slane %v1106_v19, 6  ;;  %v1143_v52 = vrot.slane %v2393_v56, 6  ;;  %v1109_v19 = vmul.f32 %v1095_v36, %v2062_v10  ;;  %v2426_v53 = vsel %vm665_vm9, %v911_v8, %v2844_v18 }
 0x10d   : > { %v446_v56 = vmul.f32 %v437_v25, %v2364_v51  ;;  %v539_v38 = vsel %vm248_vm1, %v2225_v1, %v2250_v54  ;;  %v1140_v8 = vrot.slane %v1110_v60, 6  ;;  %v1152_v26 = vrot.slane %v1115_v23, 6  ;;  %v2448_v1 = vld [vmem:[#allocation2 + $0x80] sm:$0x7] }
 0x10e   : > { %472 = vrot.lane.b32.xlu0 %v448_v34, %s1772_s30  ;;  %v2429_v4 = vsel %vm1029_vm10, %v1142_v29, %v1143_v52  ;;  %v749_v34 = vmul.f32 %v2272_v0, %v2180_v39  ;;  %v546_v29 = vmul.f32 %v2227_v17, %v2283_v42  ;;  %v1136_v25 = vrot.slane %v1104_v43, 6 }
 0x10f   : > { %478 = vrot.lane.b32.xlu1 %v451_v50, %s1772_s30  ;;  %v2441_v50 = vmul.f32 %v2410_v28, %v2094_v21  ;;  %v553_v18 = vmul.f32 %v539_v38, %v2097_v22  ;;  %v1116_v39 = vmul.f32 %v1097_v30, %v2215_v3  ;;  %v1139_v54 = vrot.slane %v1105_v16, 6 }
 0x110   : > { %v770_v51 = vrot.slane %v2406_v63, 3  ;;  %v748_v7 = vmul.f32 %v2288_v15, %v2340_v41  ;;  %v753_v17 = vmul.f32 %v2288_v15, %v2448_v1  ;;  %v784_v60 = vrot.slane %v749_v34, 3 }
 0x111   : > { %v1137_v23 = vrot.slane %v1109_v19, 6  ;;  %v886_v43 = vmul.f32 %v2410_v28, %v2209_v57  ;;  %v2462_v30 = vsel %vm248_vm1, %v2329_v32, %v2327_v20  ;;  %v2470_v16 = vsel %vm1029_vm10, %v1140_v8, %v1152_v26 }
 0x112   : > { %468 = vrot.lane.b32.xlu0 %v446_v56, %s1772_s30  ;;  %v909_v56 = vrot.slane %v2441_v50, 3  ;;  %v1154_v19 = vrot.slane %v1116_v39, 6  ;;  %v2473_v34 = vsel %vm1029_vm10, %v1139_v54, %v1140_v8  ;;  %v548_v57 = vmul.f32 %v539_v38, %v2307_v62  ;;  %v702_v50 = vld [vmem:[#allocation2 + $0x20] sm:$0xf8] }
 0x113   : > { %576 = vrot.lane.b32.xlu1 %v551_v48, %s1771_s23  ;;  %v2467_v63 = vsel %vm1029_vm10, %v1136_v25, %v1137_v23  ;;  %v922_v48 = vrot.slane %v886_v43, 3  ;;  %v785_v32 = vsel %vm665_vm9, %v770_v51, %v784_v60  ;;  %v782_v42 = vrot.slane %v748_v7, 3 }
 0x114   : > { %v2480_v25 = vmul.f32 %v2462_v30, %v2340_v41  ;;  %v1114_v39 = vmul.f32 %v1095_v36, %v2194_v47  ;;  %v2489_v8 = vsel %vm1029_vm10, %v1143_v52, %v1154_v19  ;;  %v554_v7 = vmul.f32 %v2266_v61, %v2340_v41 }
 0x115   : > { %v2483_v26 = vsel %vm665_vm9, %v909_v56, %v922_v48  ;;  %v450_v36 = vmul.f32 %v2281_v33, %v2062_v10  ;;  %v452_v61 = vmul.f32 %v2298_v11, %v2097_v22  ;;  %v552_v33 = vmul.f32 %v2356_v45, %v2094_v21 }
 0x116   : > { %566 = vrot.lane.b32.xlu0 %v546_v29, %s1771_s23  ;;  %v792_v29 = vrot.slane %v753_v17, 3  ;;  %v1150_v38 = vrot.slane %v1114_v39, 6  ;;  %v915_v17 = vrot.slane %v2480_v25, 3  ;;  %v743_v19 = vmul.f32 %v2288_v15, %v702_v50 }
 0x117   : > { %580 = vrot.lane.b32.xlu1 %v553_v18, %s1771_s23  ;;  %v878_v18 = vmul.f32 %v2462_v30, %v702_v50 }
 0x118   : > { %v793_v60 = vsel %vm665_vm9, %v782_v42, %v792_v29  ;;  %v2496_v43 = vsel %vm1029_vm10, %v1137_v23, %v1150_v38  ;;  %v739_v23 = vmul.f32 %v2272_v0, %v2051_v6  ;;  %v880_v6 = vmul.f32 %v2310_v13, %v2062_v10 }
 0x119   : > { %v914_v54 = vrot.slane %v878_v18, 3  ;;  %v885_v0 = vmul.f32 %v2310_v13, %v2192_v46  ;;  %v1224_v18 = vpop.permute.xlu0 %1223 }
 0x11a   : > { %570 = vrot.lane.b32.xlu0 %v548_v57, %s1771_s23  ;;  %v769_v48 = vrot.slane %v739_v23, 3  ;;  %v876_v57 = vmul.f32 %v2410_v28, %v2101_v27  ;;  %v887_v27 = vmul.f32 %v2349_v12, %v2211_v58  ;;  %v906_v28 = vrot.slane %v880_v6, 3 }
 0x11b   : > { %804 = vrot.lane.b32.xlu1 %v785_v32, %s1772_s30  ;;  %v916_v52 = vsel %vm665_vm9, %v914_v54, %v915_v17  ;;  %v920_v50 = vrot.slane %v885_v0, 3  ;;  %v839_v32 = vld [vmem:[#allocation2 + $0x88] sm:$0x7]  ;;  %v875_v58 = vmul.f32 %v2310_v13, %v2105_v31  ;;  %v2892_v31 = vld [vmem:[#allocation24_spill] sm:$0xff]  ;;  %v2893_v54 = vld [vmem:[#allocation17_spill] sm:$0xff] }
 0x11c   : > { %v771_v11 = vsel %vm665_vm9, %v769_v48, %v770_v51  ;;  %v908_v45 = vrot.slane %v876_v57, 3  ;;  %v889_v46 = vmul.f32 %v2327_v20, %v839_v32  ;;  %v924_v51 = vrot.slane %v887_v27, 3  ;;  %v1203_v32 = vld [vmem:[#allocation2 + $0x88] sm:$0x3f] }
 0x11d   : > { %v921_v29 = vsel %vm665_vm9, %v906_v28, %v920_v50  ;;  %v2891_v20 = vrot.slane %v2337_v14, 3  ;;  %v1113_v13 = vmul.f32 %v2342_v5, %v2892_v31  ;;  %v1226_v14 = vpop.permute.xlu1 %1225  ;;  %v1228_v23 = vpop.permute.xlu0 %1227  ;;  %v1249_v27 = vmul.f32 %v1224_v18, %v2194_v47 }
 0x11e   : > { %582 = vrot.lane.b32.xlu0 %v554_v7, %s1771_s23  ;;  %v928_v12 = vrot.slane %v889_v46, 3 }
 0x11f   : > { %812 = vrot.lane.b32.xlu1 %v793_v60, %s1772_s30  ;;  %v1148_v38 = vrot.slane %v1113_v13, 6  ;;  %v1103_v60 = vmul.f32 %v2342_v5, %v2893_v54  ;;  %v2896_v13 = vld [vmem:[#allocation18_spill] sm:$0xff] }
 0x122   : > { %476 = vrot.lane.b32.xlu0 %v450_v36, %s1772_s30  ;;  %v2571_v36 = vld [vmem:[#allocation2 + $0x80] sm:$0x3f] }
 0x123   : > { %936 = vrot.lane.b32.xlu1 %v916_v52, %s1771_s23 }
 0x126   : > { %480 = vrot.lane.b32.xlu0 %v452_v61, %s1772_s30  ;;  %v1230_v61 = vpop.permute.xlu1 %1229 }
 0x127   : > { %796 = vrot.lane.b32.xlu1 %v2316_v44, %s1772_s30  ;;  %v781_v44 = vrot.slane %v743_v19, 3 }
 0x129   : > { %v783_v15 = vsel %vm665_vm9, %v781_v44, %v782_v42  ;;  %v2890_v42 = vrot.slane %v2370_v24, 3  ;;  %v1108_v24 = vmul.f32 %v2342_v5, %v2119_v40  ;;  %v2585_v5 = vsel %vm248_vm1, %v1228_v23, %v1230_v61 }
 0x12a   : > { %578 = vrot.lane.b32.xlu0 %v552_v33, %s1771_s23  ;;  %v1133_v33 = vrot.slane %v1103_v60, 6  ;;  %v2603_v0 = vmul.f32 %v2585_v5, %v2340_v41 }
 0x12b   : > { %800 = vrot.lane.b32.xlu1 %v2321_v9, %s1772_s30  ;;  %v910_v9 = vsel %vm665_vm9, %v908_v45, %v909_v56  ;;  %v929_v56 = vsel %vm665_vm9, %v2891_v20, %v928_v12  ;;  %v1134_v39 = vrot.slane %v1108_v24, 6  ;;  %v1239_v20 = vmul.f32 %v1224_v18, %v2117_v37 }
 0x12e   : > { %794 = vrot.lane.b32.xlu0 %v771_v11, %s1772_s30 }
 0x12f   : > { %808 = vrot.lane.b32.xlu1 %v2324_v49, %s1772_s30  ;;  %v925_v49 = vsel %vm665_vm9, %v2890_v42, %v924_v51  ;;  %v1284_v42 = vrot.slane %v1249_v27, 6 }
 0x132   : > { %802 = vrot.lane.b32.xlu0 %v783_v15, %s1772_s30  ;;  %v1232_v15 = vsel %vm248_vm1, %v1226_v14, %v1228_v23  ;;  %v2897_v23 = vld [vmem:[#allocation28_spill] sm:$0xff] }
 0x133   : > { %932 = vrot.lane.b32.xlu1 %v910_v9, %s1771_s23  ;;  %v1246_v46 = vmul.f32 %v1232_v15, %v2097_v22  ;;  %v1251_v51 = vmul.f32 %v1232_v15, %v2215_v3 }
 0x136   : > { %798 = vrot.lane.b32.xlu0 %v2375_v55, %s1772_s30  ;;  %v905_v55 = vrot.slane %v875_v58, 3 }
 0x137   : > { %940 = vrot.lane.b32.xlu1 %v921_v29, %s1771_s23 }
 0x13a   : > { %806 = vrot.lane.b32.xlu0 %v2378_v59, %s1772_s30  ;;  %v907_v59 = vsel %vm665_vm9, %v905_v55, %v906_v28  ;;  %v1288_v55 = vrot.slane %v1251_v51, 6 }
 0x13b   : > { %944 = vrot.lane.b32.xlu1 %v925_v49, %s1771_s23  ;;  %v2895_v49 = vld [vmem:[#allocation32_spill] sm:$0xff] }
 0x13c   : > { %v1248_v12 = vmul.f32 %v1230_v61, %v2895_v49 }
 0x13e   : > { %810 = vrot.lane.b32.xlu0 %v2419_v2, %s1772_s30  ;;  %v888_v2 = vmul.f32 %v2462_v30, %v2448_v1  ;;  %v1149_v30 = vsel %vm1029_vm10, %v1134_v39, %v1148_v38  ;;  %v1282_v3 = vrot.slane %v1248_v12, 6  ;;  %v2904_v12 = vld [vmem:[#allocation40_spill] sm:$0xff] }
 0x13f   : > { %948 = vrot.lane.b32.xlu1 %v929_v56, %s1771_s23  ;;  %v1276_v56 = vrot.slane %v1246_v46, 6 }
 0x140   : > { %v926_v7 = vrot.slane %v888_v2, 3  ;;  %v1269_v2 = vrot.slane %v1239_v20, 6 }
 0x142   : > { %930 = vrot.lane.b32.xlu0 %v907_v59, %s1771_s23  ;;  %v1241_v59 = vmul.f32 %v1232_v15, %v2896_v13 }
 0x143   : > { %1160 = vrot.lane.b32.xlu1 %v2467_v63, %s1772_s30  ;;  %v2894_v63 = vld [vmem:[#allocation41_spill] sm:$0xff] }
 0x144   : > { %v1112_v52 = vmul.f32 %v2894_v63, %v2340_v41  ;;  %v1117_v1 = vmul.f32 %v2894_v63, %v2571_v36  ;;  %v1279_v41 = vrot.slane %v2603_v0, 6  ;;  %v1275_v38 = vrot.slane %v1241_v59, 6 }
 0x146   : > { %934 = vrot.lane.b32.xlu0 %v2426_v53, %s1771_s23  ;;  %v2579_v53 = vsel %vm248_vm1, %v1224_v18, %v1226_v14  ;;  %v1146_v19 = vrot.slane %v1112_v52, 6  ;;  %v1156_v48 = vrot.slane %v1117_v1, 6  ;;  %v1289_v14 = vsel %vm1029_vm10, %v1276_v56, %v1288_v55 }
 0x147   : > { %1164 = vrot.lane.b32.xlu1 %v2429_v4, %s1772_s30  ;;  %v927_v4 = vsel %vm665_vm9, %v915_v17, %v926_v7  ;;  %v1240_v57 = vmul.f32 %v2579_v53, %v2113_v35  ;;  %v2594_v6 = vmul.f32 %v2579_v53, %v2094_v21  ;;  %v1135_v35 = vsel %vm1029_vm10, %v1133_v33, %v1134_v39  ;;  %v1202_v39 = vld [vmem:[#allocation2 + $0x28] sm:$0xc0] }
 0x148   : > { %v1157_v11 = vsel %vm1029_vm10, %v1146_v19, %v1156_v48  ;;  %v1250_v1 = vmul.f32 %v2579_v53, %v2897_v23 }
 0x149   : > { %v1272_v44 = vrot.slane %v1240_v57, 6  ;;  %v1273_v45 = vrot.slane %v2594_v6, 6 }
 0x14a   : > { %942 = vrot.lane.b32.xlu0 %v2483_v26, %s1771_s23  ;;  %v1066_v26 = vld [vmem:[#allocation2 + $0x20] sm:$0xc0]  ;;  %v1286_v33 = vrot.slane %v1250_v1, 6 }
 0x14b   : > { %1168 = vrot.lane.b32.xlu1 %v1149_v30, %s1772_s30  ;;  %v1107_v25 = vmul.f32 %v2894_v63, %v1066_v26  ;;  %v1242_v17 = vmul.f32 %v2585_v5, %v1066_v26  ;;  %v1274_v28 = vsel %vm1029_vm10, %v1272_v44, %v1273_v45  ;;  %v1252_v30 = vmul.f32 %v2585_v5, %v2571_v36  ;;  %v369_v26 = vld [vmem:[#allocation6] ss:$8 sm:$0xf] }
 0x14c   : > { %v1287_v57 = vsel %vm1029_vm10, %v1273_v45, %v1286_v33  ;;  %v2898_v5 = vld [vmem:[#allocation14_spill] sm:$0xff] }
 0x14d   : > { %v1278_v9 = vrot.slane %v1242_v17, 6  ;;  %v1145_v50 = vrot.slane %v1107_v25, 6  ;;  %v1290_v48 = vrot.slane %v1252_v30, 6  ;;  %v374_v17 = vrot.slane %v369_v26, %v2898_v5 }
 0x14e   : > { %946 = vrot.lane.b32.xlu0 %v927_v4, %s1771_s23 }
 0x14f   : > { %1172 = vrot.lane.b32.xlu1 %v2470_v16, %s1772_s30  ;;  %v1244_v16 = vmul.f32 %v1224_v18, %v2062_v10  ;;  %v1147_v47 = vsel %vm1029_vm10, %v1145_v50, %v1146_v19  ;;  %v1280_v29 = vsel %vm1029_vm10, %v1278_v9, %v1279_v41  ;;  %v1291_v53 = vsel %vm1029_vm10, %v1279_v41, %v1290_v48  ;;  %v2901_v50 = vld [vmem:[#allocation16_spill] sm:$0xff] }
 0x151   : > { %v1270_v58 = vrot.slane %v1244_v16, 6  ;;  %v2900_v16 = vld [vmem:[#allocation15_spill] sm:$0xff] }
 0x152   : > { %1158 = vrot.lane.b32.xlu0 %v1135_v35, %s1772_s30  ;;  %v2899_v35 = vld [vmem:[#allocation39_spill] sm:$0xff]  ;;  %v386_v45 = vrot.slane %v369_v26, %v2900_v16 }
 0x153   : > { %1176 = vrot.lane.b32.xlu1 %v1157_v11, %s1772_s30  ;;  %v1285_v24 = vsel %vm1029_vm10, %v1270_v58, %v1284_v42  ;;  %v1271_v7 = vsel %vm1029_vm10, %v1269_v2, %v1270_v58  ;;  %v391_v11 = vmul.f32 %v374_v17, %v2899_v35  ;;  %v2903_v42 = vld [vmem:[#allocation38_spill] sm:$0xff] }
 0x154   : > { %v394_v9 = vmul.f32 %v386_v45, %v2307_v62 }
 0x156   : > { %1162 = vrot.lane.b32.xlu0 %v2473_v34, %s1772_s30  ;;  %v1253_v34 = vmul.f32 %v1230_v61, %v1203_v32  ;;  %v382_v32 = vrot.slane %v369_v26, %v2901_v50 }
 0x157   : > { %1296 = vrot.lane.b32.xlu1 %v1274_v28, %s1771_s23 }
 0x158   : > { %v1292_v31 = vrot.slane %v1253_v34, 6  ;;  %v393_v34 = vmul.f32 %v382_v32, %v2904_v12 }
 0x15a   : > { %1166 = vrot.lane.b32.xlu0 %v1147_v47, %s1772_s30  ;;  %v1293_v37 = vsel %vm1029_vm10, %v1282_v3, %v1292_v31  ;;  %v2902_v47 = vld [vmem:[#allocation13_spill] sm:$0xff]  ;;  %v2905_v31 = vld [vmem:[#allocation19_spill] sm:$0xff] }
 0x15b   : > { %1300 = vrot.lane.b32.xlu1 %v1280_v29, %s1771_s23  ;;  %v378_v29 = vrot.slane %v369_v26, %v2902_v47 }
 0x15d   : > { %v392_v49 = vmul.f32 %v378_v29, %v2903_v42 }
 0x15e   : > { %1170 = vrot.lane.b32.xlu0 %v2496_v43, %s1772_s30  ;;  %v1243_v43 = vmul.f32 %v1230_v61, %v1202_v39 }
 0x15f   : > { %1304 = vrot.lane.b32.xlu1 %v1285_v24, %s1771_s23 }
 0x160   : > { %v1281_v52 = vrot.slane %v1243_v43, 6 }
 0x162   : > { %1174 = vrot.lane.b32.xlu0 %v2489_v8, %s1772_s30  ;;  %v1277_v8 = vsel %vm1029_vm10, %v1275_v38, %v1276_v56  ;;  %v1283_v4 = vsel %vm1029_vm10, %v1281_v52, %v1282_v3  ;;  %v2906_v38 = vld [vmem:[#allocation21_spill] sm:$0xff] }
 0x163   : > { %1308 = vrot.lane.b32.xlu1 %v1289_v14, %s1771_s23 }
 0x165   : > { %v2636_v18 = vpop.permute.xlu1 %584  ;;  %v575_v54 = vpop.permute.xlu0 %574 }
 0x166   : > { %1294 = vrot.lane.b32.xlu0 %v1271_v7, %s1771_s23 }
 0x167   : > { %1312 = vrot.lane.b32.xlu1 %v1293_v37, %s1771_s23 }
 0x169   : > { %v573_v60 = vpop.permute.xlu1 %572 }
 0x16a   : > { %v589_v63 = vsel %vm248_vm1, %v573_v60, %v575_v54  ;;  %1298 = vrot.lane.b32.xlu0 %v1277_v8, %s1771_s23 }
 0x16d   : > { %v467_v61 = vpop.permute.xlu1 %466 }
 0x16e   : > { %1302 = vrot.lane.b32.xlu0 %v1283_v4, %s1771_s23  ;;  %v2908_v4 = vld [vmem:[#allocation23_spill] sm:$0xff] }
 0x171   : > { %v471_v19 = vpop.permute.xlu1 %470 }
 0x172   : > { %1306 = vrot.lane.b32.xlu0 %v1287_v57, %s1771_s23  ;;  %v395_v57 = vmul.f32 %v374_v17, %v2119_v40 }
 0x175   : > { %v475_v6 = vpop.permute.xlu1 %474 }
 0x176   : > { %1310 = vrot.lane.b32.xlu0 %v1291_v53, %s1771_s23  ;;  %v396_v53 = vmul.f32 %v378_v29, %v2062_v10 }
 0x178   : > { %v2654_v25 = vpop.permute.xlu0 %938 }
 0x179   : > { %v483_v36 = vpop.permute.xlu1 %482 }
 0x17c   : > { %v465_v0 = vpop.permute.xlu0 %464 }
 0x17d   : > { %v569_v44 = vpop.permute.xlu1 %568  ;;  %v485_v27 = vsel %vm484_vm11, %v465_v0, %v467_v61 }
 0x17e   : > { %v501_v15 = vadd.f32 %v485_v27, %v391_v11  ;;  %v397_v27 = vmul.f32 %v382_v32, %v2094_v21  ;;  %v2909_v32 = vld [vmem:[#allocation33_spill] sm:$0xff] }
 0x180   : > { %v473_v41 = vpop.permute.xlu0 %472 }
 0x181   : > { %v479_v28 = vpop.permute.xlu1 %478  ;;  %v488_v46 = vsel %vm484_vm11, %v471_v19, %v473_v41 }
 0x182   : > { %v504_v51 = vadd.f32 %v488_v46, %v394_v9 }
 0x184   : > { %v605_v58 = vadd.f32 %v589_v63, %v504_v51  ;;  %v469_v20 = vpop.permute.xlu0 %468 }
 0x185   : > { %v577_v56 = vpop.permute.xlu1 %576  ;;  %v486_v55 = vsel %vm484_vm11, %v467_v61, %v469_v20  ;;  %v487_v62 = vsel %vm484_vm11, %v469_v20, %v471_v19  ;;  %v2907_v61 = vld [vmem:[#allocation20_spill] sm:$0xff]  ;;  %v2911_v20 = vld [vmem:[#allocation29_spill] sm:$0xff] }
 0x186   : > { %v502_v24 = vadd.f32 %v486_v55, %v392_v49  ;;  %v503_v3 = vadd.f32 %v487_v62, %v393_v34  ;;  %v697_v13 = vadd.f32 %v2905_v31, %v605_v58  ;;  %v2912_v55 = vld [vmem:[#allocation30_spill] sm:$0xff] }
 0x188   : > { %v567_v59 = vpop.permute.xlu0 %566 }
 0x189   : > { %v581_v14 = vpop.permute.xlu1 %580  ;;  %v586_v2 = vsel %vm248_vm1, %v567_v59, %v569_v44 }
 0x18a   : > { %v602_v39 = vadd.f32 %v586_v2, %v501_v15  ;;  %v398_v15 = vmul.f32 %v386_v45, %v2097_v22  ;;  %v2910_v45 = vld [vmem:[#allocation35_spill] sm:$0xff] }
 0x18c   : > { %v571_v37 = vpop.permute.xlu0 %570  ;;  %v694_v7 = vadd.f32 %v2906_v38, %v602_v39 }
 0x18d   : > { %v805_v43 = vpop.permute.xlu1 %804  ;;  %v587_v54 = vsel %vm248_vm1, %v569_v44, %v571_v37  ;;  %v588_v63 = vsel %vm248_vm1, %v571_v37, %v573_v60  ;;  %v2913_v37 = vld [vmem:[#allocation27_spill] sm:$0xff] }
 0x18e   : > { %v603_v8 = vadd.f32 %v587_v54, %v502_v24  ;;  %v604_v52 = vadd.f32 %v588_v63, %v503_v3 }
 0x190   : > { %v583_v23 = vpop.permute.xlu0 %582  ;;  %v695_v30 = vadd.f32 %v2907_v61, %v603_v8  ;;  %v696_v33 = vadd.f32 %v2908_v4, %v604_v52 }
 0x191   : > { %v813_v1 = vpop.permute.xlu1 %812  ;;  %v592_v19 = vsel %vm248_vm1, %v581_v14, %v583_v23  ;;  %v593_v48 = vsel %vm248_vm1, %v583_v23, %v2636_v18 }
 0x194   : > { %v477_v26 = vpop.permute.xlu0 %476 }
 0x195   : > { %v937_v0 = vpop.permute.xlu1 %936  ;;  %v489_v60 = vsel %vm484_vm11, %v475_v6, %v477_v26  ;;  %v490_v35 = vsel %vm484_vm11, %v477_v26, %v479_v28 }
 0x196   : > { %v505_v11 = vadd.f32 %v489_v60, %v395_v57  ;;  %v506_v44 = vadd.f32 %v490_v35, %v396_v53 }
 0x198   : > { %v481_v9 = vpop.permute.xlu0 %480 }
 0x199   : > { %v797_v41 = vpop.permute.xlu1 %796  ;;  %v491_v18 = vsel %vm484_vm11, %v479_v28, %v481_v9  ;;  %v492_v40 = vsel %vm484_vm11, %v481_v9, %v483_v36 }
 0x19a   : > { %v507_v17 = vadd.f32 %v491_v18, %v397_v27  ;;  %v508_v10 = vadd.f32 %v492_v40, %v398_v15  ;;  %v2914_v27 = vld [vmem:[#allocation25_spill] sm:$0xff] }
 0x19c   : > { %v608_v46 = vadd.f32 %v592_v19, %v507_v17  ;;  %v609_v51 = vadd.f32 %v593_v48, %v508_v10  ;;  %v579_v29 = vpop.permute.xlu0 %578 }
 0x19d   : > { %v801_v6 = vpop.permute.xlu1 %800  ;;  %v590_v58 = vsel %vm248_vm1, %v577_v56, %v579_v29  ;;  %v591_v42 = vsel %vm248_vm1, %v579_v29, %v581_v14  ;;  %v953_v56 = vsel %vm248_vm1, %v937_v0, %v2654_v25  ;;  %v2916_v29 = vld [vmem:[#allocation26_spill] sm:$0xff] }
 0x19e   : > { %v606_v49 = vadd.f32 %v590_v58, %v505_v11  ;;  %v607_v21 = vadd.f32 %v591_v42, %v506_v44  ;;  %v700_v22 = vadd.f32 %v2909_v32, %v608_v46  ;;  %v701_v12 = vadd.f32 %v2910_v45, %v609_v51  ;;  %v2915_v46 = vld [vmem:[#allocation22_spill] sm:$0xff]  ;;  %v2917_v45 = vld [vmem:[#allocation31_spill] sm:$0xff] }
 0x1a0   : > { %v795_v34 = vpop.permute.xlu0 %794  ;;  %v698_v36 = vadd.f32 %v2911_v20, %v606_v49  ;;  %v699_v62 = vadd.f32 %v2912_v55, %v607_v21 }
 0x1a1   : > { %v809_v28 = vpop.permute.xlu1 %808  ;;  %v814_v4 = vsel %vm484_vm11, %v795_v34, %v797_v41  ;;  %v2918_v34 = vld [vmem:[#allocation34_spill] sm:$0xff] }
 0x1a2   : > { %v830_v48 = vadd.f32 %v814_v4, %v694_v7 }
 0x1a4   : > { %v803_v24 = vpop.permute.xlu0 %802 }
 0x1a5   : > { %v933_v3 = vpop.permute.xlu1 %932  ;;  %v817_v31 = vsel %vm484_vm11, %v801_v6, %v803_v24 }
 0x1a6   : > { %v833_v59 = vadd.f32 %v817_v31, %v697_v13 }
 0x1a8   : > { %v969_v14 = vadd.f32 %v953_v56, %v833_v59  ;;  %v799_v2 = vpop.permute.xlu0 %798  ;;  %v2920_v59 = vld [vmem:[#allocation37_spill] sm:$0xff] }
 0x1a9   : > { %v941_v39 = vpop.permute.xlu1 %940  ;;  %v815_v53 = vsel %vm484_vm11, %v797_v41, %v799_v2  ;;  %v816_v26 = vsel %vm484_vm11, %v799_v2, %v801_v6 }
 0x1aa   : > { %v2696_v38 = vadd.f32 %v2913_v37, %v969_v14  ;;  %v831_v11 = vadd.f32 %v815_v53, %v695_v30 }
 0x1ac   : > { %v807_v54 = vpop.permute.xlu0 %806 }
 0x1ad   : > { %v945_v63 = vpop.permute.xlu1 %944  ;;  %v818_v8 = vsel %vm484_vm11, %v805_v43, %v807_v54  ;;  %v832_v43 = vadd.f32 %v816_v26, %v696_v33  ;;  %v819_v9 = vsel %vm484_vm11, %v807_v54, %v809_v28 }
 0x1ae   : > { %v834_v52 = vadd.f32 %v818_v8, %v698_v36  ;;  %v835_v41 = vadd.f32 %v819_v9, %v699_v62 }
 0x1b0   : > { %v811_v23 = vpop.permute.xlu0 %810 }
 0x1b1   : > { %v949_v61 = vpop.permute.xlu1 %948  ;;  %v821_v13 = vsel %vm484_vm11, %v811_v23, %v813_v1  ;;  %v820_v30 = vsel %vm484_vm11, %v809_v28, %v811_v23  ;;  %v1368_v23 = vld [vmem:[%s2819_s3] sm:$0xf] }
 0x1b2   : > { %v837_v19 = vadd.f32 %v821_v13, %v701_v12  ;;  %v836_v21 = vadd.f32 %v820_v30, %v700_v22  ;;  %v1373_v26 = vrot.slane %v1368_v23, %v2898_v5 }
 0x1b4   : > { %v931_v25 = vpop.permute.xlu0 %930 }
 0x1b5   : > { %v1161_v57 = vpop.permute.xlu1 %1160  ;;  %v950_v60 = vsel %vm248_vm1, %v931_v25, %v933_v3 }
 0x1b6   : > { %v966_v35 = vadd.f32 %v950_v60, %v830_v48 }
 0x1b8   : > { %v935_v44 = vpop.permute.xlu0 %934  ;;  %v1058_v15 = vadd.f32 %v2914_v27, %v966_v35 }
 0x1b9   : > { %v951_v1 = vsel %vm248_vm1, %v933_v3, %v935_v44  ;;  %v952_v7 = vsel %vm248_vm1, %v935_v44, %v937_v0  ;;  %v1165_v17 = vpop.permute.xlu1 %1164  ;;  %v2919_v3 = vld [vmem:[#allocation36_spill] sm:$0xff] }
 0x1ba   : > { %v967_v18 = vadd.f32 %v951_v1, %v831_v11  ;;  %v968_v40 = vadd.f32 %v952_v7, %v832_v43  ;;  %v1377_v1 = vrot.slane %v1368_v23, %v2902_v47 }
 0x1bc   : > { %v943_v10 = vpop.permute.xlu0 %942  ;;  %v1059_v51 = vadd.f32 %v2915_v46, %v967_v18  ;;  %v1060_v6 = vadd.f32 %v2916_v29, %v968_v40  ;;  %v1381_v40 = vrot.slane %v1368_v23, %v2901_v50 }
 0x1bd   : > { %v954_v33 = vsel %vm248_vm1, %v941_v39, %v943_v10  ;;  %v955_v58 = vsel %vm248_vm1, %v943_v10, %v945_v63  ;;  %v1169_v32 = vpop.permute.xlu1 %1168 }
 0x1be   : > { %v970_v42 = vadd.f32 %v954_v33, %v834_v52  ;;  %v971_v49 = vadd.f32 %v955_v58, %v835_v41  ;;  %v1338_v52 = vld [vmem:[#allocation8] sm:$0xf] }
 0x1bf   : > { %v1343_v13 = vrot.slane %v1338_v52, %v2898_v5  ;;  %v1347_v35 = vrot.slane %v1338_v52, %v2902_v47  ;;  %v1351_v11 = vrot.slane %v1338_v52, %v2901_v50 }
 0x1c0   : > { %v947_v0 = vpop.permute.xlu0 %946  ;;  %v1062_v12 = vadd.f32 %v2917_v45, %v970_v42  ;;  %v1063_v20 = vadd.f32 %v2918_v34, %v971_v49  ;;  %v1385_v42 = vrot.slane %v1368_v23, %v2900_v16 }
 0x1c1   : > { %v956_v36 = vsel %vm248_vm1, %v945_v63, %v947_v0  ;;  %v957_v55 = vsel %vm248_vm1, %v947_v0, %v949_v61  ;;  %v1173_v22 = vpop.permute.xlu1 %1172 }
 0x1c2   : > { %v972_v62 = vadd.f32 %v956_v36, %v836_v21  ;;  %v973_v24 = vadd.f32 %v957_v55, %v837_v19 }
 0x1c4   : > { %v1159_v28 = vpop.permute.xlu0 %1158  ;;  %v2718_v31 = vadd.f32 %v2919_v3, %v972_v62  ;;  %v2721_v56 = vadd.f32 %v2920_v59, %v973_v24 }
 0x1c5   : > { %v1177_v2 = vpop.permute.xlu1 %1176  ;;  %v1178_v63 = vsel %vm484_vm11, %v1159_v28, %v1161_v57 }
 0x1c6   : > { %v1194_v61 = vadd.f32 %v1178_v63, %v1058_v15 }
 0x1c8   : > { %v1163_v14 = vpop.permute.xlu0 %1162 }
 0x1c9   : > { %v1297_v54 = vpop.permute.xlu1 %1296  ;;  %v1179_v48 = vsel %vm484_vm11, %v1161_v57, %v1163_v14  ;;  %v1180_v25 = vsel %vm484_vm11, %v1163_v14, %v1165_v17 }
 0x1ca   : > { %v1195_v43 = vadd.f32 %v1179_v48, %v1059_v51  ;;  %v1196_v44 = vadd.f32 %v1180_v25, %v1060_v6 }
 0x1cc   : > { %v1167_v39 = vpop.permute.xlu0 %1166 }
 0x1cd   : > { %v1301_v4 = vpop.permute.xlu1 %1300  ;;  %v1181_v27 = vsel %vm484_vm11, %v1165_v17, %v1167_v39  ;;  %v1355_v17 = vrot.slane %v1338_v52, %v2900_v16 }
 0x1ce   : > { %v1197_v46 = vadd.f32 %v1181_v27, %v2696_v38 }
 0x1d0   : > { %v1171_v37 = vpop.permute.xlu0 %1170 }
 0x1d1   : > { %v1305_v18 = vpop.permute.xlu1 %1304  ;;  %v1182_v51 = vsel %vm484_vm11, %v1169_v32, %v1171_v37  ;;  %v1183_v29 = vsel %vm484_vm11, %v1171_v37, %v1173_v22 }
 0x1d2   : > { %v1198_v21 = vadd.f32 %v1182_v51, %v1062_v12  ;;  %v1199_v32 = vadd.f32 %v1183_v29, %v1063_v20 }
 0x1d4   : > { %v1175_v8 = vpop.permute.xlu0 %1174 }
 0x1d5   : > { %v1184_v0 = vsel %vm484_vm11, %v1173_v22, %v1175_v8  ;;  %v1309_v45 = vpop.permute.xlu1 %1308  ;;  %v1185_v24 = vsel %vm484_vm11, %v1175_v8, %v1177_v2 }
 0x1d6   : > { %v1200_v20 = vadd.f32 %v1184_v0, %v2718_v31  ;;  %v1201_v22 = vadd.f32 %v1185_v24, %v2721_v56 }
 0x1d8   : > { %v1295_v19 = vpop.permute.xlu0 %1294 }
 0x1d9   : > { %v1314_v53 = vsel %vm248_vm1, %v1295_v19, %v1297_v54  ;;  %v1313_v14 = vpop.permute.xlu1 %1312 }
 0x1da   : > { %v1330_v60 = vadd.f32 %v1314_v53, %v1194_v61 }
 0x1dc   : > { %v1360_v15 = vmul.f32 %v1343_v13, %v1330_v60  ;;  %v1299_v9 = vpop.permute.xlu0 %1298 }
 0x1dd   : > { %v1315_v57 = vsel %vm248_vm1, %v1297_v54, %v1299_v9  ;;  %v1316_v7 = vsel %vm248_vm1, %v1299_v9, %v1301_v4 }
 0x1de   : > { %v1390_v5 = vadd.f32 %v1373_v26, %v1360_v15  ;;  %v1331_v41 = vadd.f32 %v1315_v57, %v1195_v43  ;;  %v1332_v10 = vadd.f32 %v1316_v7, %v1196_v44 }
 0x1e0   : > { %v1398_v47 = vmax.f32 %v1390_v5, 0.0  ;;  %v1361_v6 = vmul.f32 %v1347_v35, %v1331_v41  ;;  %v1362_v30 = vmul.f32 %v1351_v11, %v1332_v10  ;;  %v1303_v33 = vpop.permute.xlu0 %1302 }
 0x1e1   : > { %v1317_v58 = vsel %vm248_vm1, %v1301_v4, %v1303_v33 }
 0x1e2   : > { %1406 = vst [vmem:[%s2746_s7] sm:$0xff] %v1398_v47  ;;  %v1391_v50 = vadd.f32 %v1377_v1, %v1361_v6  ;;  %v1392_v38 = vadd.f32 %v1381_v40, %v1362_v30  ;;  %v1333_v49 = vadd.f32 %v1317_v58, %v1197_v46 }
 0x1e4   : > { %v1399_v34 = vmax.f32 %v1391_v50, 0.0  ;;  %v1400_v36 = vmax.f32 %v1392_v38, 0.0  ;;  %v1363_v55 = vmul.f32 %v1355_v17, %v1333_v49  ;;  %v1307_v62 = vpop.permute.xlu0 %1306 }
 0x1e5   : > { %v1318_v28 = vsel %vm248_vm1, %v1305_v18, %v1307_v62  ;;  %v1319_v3 = vsel %vm248_vm1, %v1307_v62, %v1309_v45 }
 0x1e6   : > { %1407 = vst [vmem:[%s2746_s7 + $0x8] sm:$0xff] %v1399_v34  ;;  %1408 = vst [vmem:[%s2746_s7 + $0x10] sm:$0xff] %v1400_v36  ;;  %v1393_v16 = vadd.f32 %v1385_v42, %v1363_v55  ;;  %v1334_v59 = vadd.f32 %v1318_v28, %v1198_v21  ;;  %v1335_v12 = vadd.f32 %v1319_v3, %v1199_v32 }
 0x1e8   : > { %v1401_v39 = vmax.f32 %v1393_v16, 0.0  ;;  %v1364_v37 = vmul.f32 %v1343_v13, %v1334_v59  ;;  %v1365_v2 = vmul.f32 %v1347_v35, %v1335_v12  ;;  %v1311_v54 = vpop.permute.xlu0 %1310 }
 0x1e9   : > { %v1320_v8 = vsel %vm248_vm1, %v1309_v45, %v1311_v54  ;;  %v1321_v63 = vsel %vm248_vm1, %v1311_v54, %v1313_v14 }
 0x1ea   : > { %1409 = vst [vmem:[%s2746_s7 + $0x18] sm:$0xff] %v1401_v39  ;;  %v1394_v52 = vadd.f32 %v1373_v26, %v1364_v37  ;;  %v1395_v23 = vadd.f32 %v1377_v1, %v1365_v2  ;;  %v1336_v61 = vadd.f32 %v1320_v8, %v1200_v20  ;;  %v1337_v31 = vadd.f32 %v1321_v63, %v1201_v22 }
 0x1ec   : > { %v1402_v56 = vmax.f32 %v1394_v52, 0.0  ;;  %v1403_v4 = vmax.f32 %v1395_v23, 0.0  ;;  %v1366_v19 = vmul.f32 %v1351_v11, %v1336_v61  ;;  %v1367_v13 = vmul.f32 %v1355_v17, %v1337_v31 }
 0x1ee   : > { %1410 = vst [vmem:[%s2746_s7 + $0x20] sm:$0xff] %v1402_v56  ;;  %1411 = vst [vmem:[%s2746_s7 + $0x28] sm:$0xff] %v1403_v4  ;;  %v1396_v48 = vadd.f32 %v1381_v40, %v1366_v19  ;;  %v1397_v25 = vadd.f32 %v1385_v42, %v1367_v13 }
 0x1f0   : > { %v1404_v53 = vmax.f32 %v1396_v48, 0.0  ;;  %v1405_v26 = vmax.f32 %v1397_v25, 0.0 }
 0x1f2   : > { %1412 = vst [vmem:[%s2746_s7 + $0x30] sm:$0xff] %v1404_v53  ;;  %1413 = vst [vmem:[%s2746_s7 + $0x38] sm:$0xff] %v1405_v26 }
 0x1f3   : > { %1707 = shalt.err (!%p1704_p3)
}
 0x1f4   : > { %s1708_s8 = scalar_lea.hbm %s2768_s28, 1024  ;;  %s1712_s5 = scalar_lea.hbm %s2820_s4, 2048 }
 0x1f5   : > { %p1709_p11 = scmp.ne.s32.totalorder %s2768_s28, %s1708_s8  ;;  %p1713_p4 = scmp.lt.s32.totalorder %s2768_s28, %s2820_s4 }
 0x1f6   : > { %p1714_p6 = scmp.lt.s32.totalorder %s1712_s5, %s1708_s8 }
 0x1f7   : > { %p1710_p9 = pnand %p1709_p11, %p2921_p2 }
 0x1f8   : > { %p1715_p8 = por %p1714_p6, %p1713_p4 }
 0x1f9   : > { %p1711_p1 = pneg %p1710_p9 }
 0x1fb   : > { %p1716_p5 = pnand %p1715_p8, %p1711_p1 }
 0x1fd   : > { %1719 = shalt.err (!%p1716_p5)
}
 0x1fe   : > { %s1774_s9 = smov 512  }
 0x1ff   : > { %1550 = dma.vmem_to_hbm [thread:$0]  (%p2921_p2), %s2770_s26, 1024, %s2768_s28, %s1415_s19, %s1774_s9, %s1774_s9, %s1772_s30  }
 0x200 PF: > { %s1443_s27 = sand.u32 1, %s1750_s15   ;;  %p2922_p7 = scmp.ne.s32.totalorder %s2849_s22, 0 }
 0x201   : > { %p2923_p12 = scmp.ge.s32.totalorder %s1762_s18, 2  ;;  %s1444_s24 = scalar_lea.sflag [#allocation5], %s1443_s27 }
 0x203   : > { %p1564_p13 = pnand %p2923_p12, %p2922_p7 }
 0x205   : > { %p1565_p0 = pneg %p1564_p13 }
 0x207   : > { %1745 = dma.done.wait (%p1565_p0), %s1444_s24, 1024  }
 0x208   : > { %1747 = vsyncadd (%p1565_p0), %s1444_s24, 4294966272  ;;  %p18_p10 = scmp.ge.s32.totalorder %s1875_s11, 4   ;;  %s2924_s15 = smov %s1754_s16 }
 0x209   : > { %s2925_s16 = smov %s1758_s17  ;;  %s2926_s17 = smov %s1891_s20 }
 0x20a   : > { %s2927_s18 = smov %s1875_s11  ;;  %20 = sbr.rel (!%p18_p10) target bundleno = 6 (0x6), region = 97 }
 0x20f   :  { %1449 = vsyncpa [#allocation4], 1 }
 0x210   :  { %1451 = vsyncpa [#allocation4 + $0x1], 1 }
 0x211   :  { %1452 = vsyncpa [#allocation7], 1 }
 0x212   :  { %1453 = vsyncpa [#allocation5], 1 }
 0x213   :  { %1455 = vsyncpa [#allocation5 + $0x1], 1 }

</bundles_post_ra>
